<compile_context>
chip_gen: v5e
topology: v5e:2x2
jax: 0.10.0
libtpu: 0.0.40
codegen_flags: <defaults>
</compile_context>

<pallas_src>
import functools

import numpy as np
import jax
import jax.numpy as jnp
from jax import lax
from jax.experimental import pallas as pl
from jax.experimental.pallas import tpu as pltpu


def _round_up(x, m):
    return ((x + m - 1) // m) * m


# ----------------------------------------------------------------------------
# Pallas kernel: fused RPN conv head
#   3x3 'same' conv (row-shifted vertical taps, ReLU)
#   + fused 1x1 convs into one lane-dense (C, 128) matmul
#   + in-kernel sigmoid (tanh form) on the 9 score columns.
# ----------------------------------------------------------------------------
def rpn_head_pallas(x_nhwc, w1, b1, wc, bc, wb, bb, *, tile_rows=None):
    H, W, C = x_nhwc.shape
    NA = wc.shape[1]                 # 9 objectness columns
    NB = wb.shape[1]                 # 36 box-delta columns
    NOUT = NA + NB                   # 45
    NPAD = 128                       # lane-dense fused output width

    # Row stride padded to a multiple of 16 so every in-kernel bf16 slice is
    # sublane-tile aligned.
    WP = _round_up(W + 2, 16)

    # Adaptive tile height: single step for small maps, ~1K flattened rows per
    # step for large maps (keeps n_tiles >= 2 so v7x's two TCs both get work).
    if tile_rows is not None:
        TH = max(1, min(int(tile_rows), H))
    elif H * WP <= 4096:
        TH = H
    else:
        TH = max(1, min(H, max(1, 1024 // WP)))
    Ht = _round_up(H, TH)
    TM = TH * WP                     # flattened output rows per grid step
    n_tiles = Ht // TH
    win_rows = TM + 2 * WP           # input window incl. +-1 row halo

    fuse_ky = (3 * C) % 128 == 0     # fuse the 3 vertical taps into K=9C

    # --- wrapper-side prep (plain XLA, cheap) --------------------------------
    # Cast to bf16 FIRST so padding/concat moves half the bytes.
    xb = x_nhwc.astype(jnp.bfloat16)
    # Zero-padded grid; real feature values at rows [1, H], cols [1, W].
    xg = jnp.zeros((Ht + 2, WP + 2, C), jnp.bfloat16)
    xg = xg.at[1:H + 1, 1:W + 1, :].set(xb)
    # Horizontal (kx) taps gathered into the lane dim -> (Ht+2, WP, 3C).
    x3 = jnp.concatenate([xg[:, 0:WP], xg[:, 1:WP + 1], xg[:, 2:WP + 2]],
                         axis=-1)
    x3 = x3.reshape((Ht + 2) * WP, 3 * C)
    # Overlapping row windows -> VMEM footprint is O(tile), auto-pipelined.
    # TODO(synk): for very large maps, stream windows from an HBM-resident x3
    # (memory_space=pl.ANY + make_async_copy) to drop this duplication pass.
    widx = jnp.arange(n_tiles)[:, None] * TM + jnp.arange(win_rows)[None, :]
    x3w = x3[widx]                   # (n_tiles, win_rows, 3C) bf16

    # Conv weights: w1[ky, kx, cin, cout]; lane order of x3 is (kx, cin).
    if fuse_ky:
        w1r = w1.reshape(9 * C, C).astype(jnp.bfloat16)          # (ky,kx,cin)
        w1_spec = pl.BlockSpec((9 * C, C), lambda i: (0, 0))
    else:
        w1r = w1.reshape(3, 3 * C, C).astype(jnp.bfloat16)
        w1_spec = pl.BlockSpec((3, 3 * C, C), lambda i: (0, 0, 0))
    b1f = b1.reshape(1, C).astype(jnp.float32)

    # Fused + lane-padded 1x1 weights: [scores | deltas | zeros] -> (C, 128).
    w2 = jnp.zeros((C, NPAD), jnp.float32)
    w2 = w2.at[:, :NA].set(wc).at[:, NA:NOUT].set(wb).astype(jnp.bfloat16)
    b2 = jnp.zeros((1, NPAD), jnp.float32)
    b2 = b2.at[:, :NA].set(bc).at[:, NA:NOUT].set(bb)
    # Column mask: 1.0 on the 9 score columns (sigmoid), 0.0 elsewhere.
    colmask = (jnp.arange(NPAD) < NA).astype(jnp.float32).reshape(1, NPAD)

    def kernel(xw_ref, w1_ref, b1_ref, w2_ref, b2_ref, mask_ref, out_ref):
        # 3x3 conv: three row-shifted taps of the (win_rows, 3C) window.
        acc = jnp.broadcast_to(b1_ref[...], (TM, C)).astype(jnp.float32)
        if fuse_ky:
            xcat = jnp.concatenate(
                [xw_ref[pl.ds(dy * WP, TM), :] for dy in range(3)], axis=-1)
            acc = acc + jnp.dot(xcat, w1_ref[...],
                                preferred_element_type=jnp.float32)
        else:
            for dy in range(3):
                xt = xw_ref[pl.ds(dy * WP, TM), :]          # (TM, 3C) bf16
                acc = acc + jnp.dot(xt, w1_ref[dy],
                                    preferred_element_type=jnp.float32)
        y = jnp.maximum(acc, 0.0).astype(jnp.bfloat16)       # ReLU -> bf16

        # Fused 1x1 convs -> one lane-dense (TM, 128) block.
        z = jnp.dot(y, w2_ref[...],
                    preferred_element_type=jnp.float32) + b2_ref[...]
        sig = 0.5 * (jnp.tanh(0.5 * z) + 1.0)                # EUP sigmoid, [0,1]
        m = jnp.broadcast_to(mask_ref[...] > 0.5, z.shape)
        out_ref[...] = jnp.where(m, sig, z)

    # VMEM budget: per-tile window + output (double-buffered), weights, f32
    # working values, plus margin.  Capped at 48 MiB (safe on v7x's 64 MiB).
    const_bytes = (w1r.size * 2 + C * 4 + C * NPAD * 2 + 2 * NPAD * 4)
    per_step = win_rows * 3 * C * 2 + TM * NPAD * 4
    work = TM * C * 4 + 3 * TM * NPAD * 4 + 3 * TM * 3 * C * 2
    est = 2 * (per_step + const_bytes) + work + (4 << 20)
    vmem_limit = int(min(max(est, 16 << 20), 48 << 20))

    out = pl.pallas_call(
        kernel,
        out_shape=jax.ShapeDtypeStruct((Ht * WP, NPAD), jnp.float32),
        grid_spec=pltpu.PrefetchScalarGridSpec(
            num_scalar_prefetch=0,
            grid=(n_tiles,),
            in_specs=[
                # Per-step overlapping window (first dim squeezed).
                pl.BlockSpec((None, win_rows, 3 * C), lambda i: (i, 0, 0)),
                w1_spec,
                pl.BlockSpec((1, C), lambda i: (0, 0)),
                pl.BlockSpec((C, NPAD), lambda i: (0, 0)),
                pl.BlockSpec((1, NPAD), lambda i: (0, 0)),
                pl.BlockSpec((1, NPAD), lambda i: (0, 0)),
            ],
            out_specs=pl.BlockSpec((TM, NPAD), lambda i: (i, 0)),
        ),
        compiler_params=pltpu.CompilerParams(
            dimension_semantics=("parallel",),
            vmem_limit_bytes=vmem_limit),
    )(x3w, w1r, b1f, w2, b2, colmask)

    # Drop the padded rows / padded lanes.
    out = out.reshape(Ht, WP, NPAD)[:H, :W, :NOUT]
    return out[..., :NA], out[..., NA:]          # (H,W,9) sigmoid'd, (H,W,36)


# ----------------------------------------------------------------------------
# Plain-JAX post-processing (fixed shapes; invalid entries masked with -inf)
# ----------------------------------------------------------------------------
def nms_fixed(boxes, scores, iou_threshold):
    n = boxes.shape[0]
    order = jnp.argsort(-scores)                      # descending by score
    b = boxes[order]
    s = scores[order]
    y1, x1, y2, x2 = b[:, 0], b[:, 1], b[:, 2], b[:, 3]
    areas = (y2 - y1) * (x2 - x1)
    yy1 = jnp.maximum(y1[:, None], y1[None, :])
    xx1 = jnp.maximum(x1[:, None], x1[None, :])
    yy2 = jnp.minimum(y2[:, None], y2[None, :])
    xx2 = jnp.minimum(x2[:, None], x2[None, :])
    inter = jnp.maximum(yy2 - yy1, 0.0) * jnp.maximum(xx2 - xx1, 0.0)
    iou = inter / (areas[:, None] + areas[None, :] - inter + 1e-9)
    valid = s > -jnp.inf

    def body(i, keep):
        suppress = (iou[i] > iou_threshold) & (jnp.arange(n) > i) & keep[i] & valid[i]
        return keep & ~suppress

    keep_sorted = lax.fori_loop(0, n, body, jnp.ones((n,), jnp.bool_))
    keep = jnp.zeros((n,), jnp.bool_).at[order].set(keep_sorted & valid)
    return keep


def postprocess(score_map, delta_map, anchor_map, anchor_valid_map, image_shape,
                max_proposals_pre_nms, max_proposals_post_nms):
    H, W, A = anchor_valid_map.shape
    anchors = anchor_map.reshape(H * W * A, 4)            # (cy, cx, h, w)
    valid = anchor_valid_map.reshape(H * W * A) > 0
    scores = score_map.reshape(H * W * A)
    deltas = delta_map.reshape(H * W * A, 4)

    # _extract_valid: boolean indexing -> fixed-shape masking (-inf score)
    scores = jnp.where(valid, scores, -jnp.inf)

    # t_convert_deltas_to_boxes (means = 0, stds = 1)
    center = anchors[:, 2:4] * deltas[:, 0:2] + anchors[:, 0:2]
    size = anchors[:, 2:4] * jnp.exp(deltas[:, 2:4])
    boxes = jnp.concatenate([center - 0.5 * size, center + 0.5 * size], axis=1)

    # sort by objectness descending, keep top max_proposals_pre_nms
    order = jnp.argsort(scores)[::-1][:max_proposals_pre_nms]
    boxes = boxes[order]
    scores = scores[order]

    # clamp to image bounds (image_shape = (channels, height, width))
    boxes = boxes.at[:, 0:2].set(jnp.maximum(boxes[:, 0:2], 0.0))
    boxes = boxes.at[:, 2].set(jnp.minimum(boxes[:, 2], float(image_shape[1])))
    boxes = boxes.at[:, 3].set(jnp.minimum(boxes[:, 3], float(image_shape[2])))

    # size filter (>= 16 in both dims) -> masking instead of dynamic gather
    heights = boxes[:, 2] - boxes[:, 0]
    widths = boxes[:, 3] - boxes[:, 1]
    scores = jnp.where((heights >= 16.0) & (widths >= 16.0), scores, -jnp.inf)

    # NMS (fixed-shape greedy; torchvision nms equivalent at iou 0.7)
    keep = nms_fixed(boxes, scores, 0.7)
    scores = jnp.where(keep, scores, -jnp.inf)
    final_order = jnp.argsort(scores)[::-1][:max_proposals_post_nms]
    proposals = boxes[final_order]
    # TODO(synk): dynamic-length outputs of boolean indexing / NMS are returned
    # as fixed-size padded arrays (padded rows carry -inf score upstream).
    return proposals


# ----------------------------------------------------------------------------
# Full forward
# ----------------------------------------------------------------------------
@functools.partial(jax.jit, static_argnames=("image_shape",
                                             "max_proposals_pre_nms",
                                             "max_proposals_post_nms"))
def rpn_forward(feature_map, anchor_map, anchor_valid_map, params,
                image_shape, max_proposals_pre_nms, max_proposals_post_nms):
    w1, b1, wc, bc, wb, bb = params
    # NCHW -> NHWC, batch of 1 (the PyTorch module asserts batch == 1)
    x = jnp.transpose(feature_map, (0, 2, 3, 1))[0]            # (H, W, C)

    scores_hw, deltas_hw = rpn_head_pallas(x, w1, b1, wc, bc, wb, bb)

    objectness_score_map = scores_hw[None]                     # (1, H, W, 9)
    box_deltas_map = deltas_hw[None]                           # (1, H, W, 36)

    proposals = postprocess(scores_hw, deltas_hw,
                            anchor_map, anchor_valid_map, image_shape,
                            max_proposals_pre_nms, max_proposals_post_nms)
    return objectness_score_map, box_deltas_map, proposals


# ----------------------------------------------------------------------------
# Deterministic parameter init (matches __init__ distributions: N(0, 0.01), b=0)
# For a real checkpoint: w1[ky, kx, cin, cout] = torch_w1[cout, cin, ky, kx],
# wc[cin, a] = torch_wc[a, cin, 0, 0], wb[cin, j] = torch_wb[j, cin, 0, 0].
# ----------------------------------------------------------------------------
def init_params(key, channels):
    k1, k2, k3 = jax.random.split(key, 3)
    w1 = jax.random.normal(k1, (3, 3, channels, channels), jnp.float32) * 0.01
    wc = jax.random.normal(k2, (channels, 9), jnp.float32) * 0.01
    wb = jax.random.normal(k3, (channels, 36), jnp.float32) * 0.01
    b1 = jnp.zeros((1, channels), jnp.float32)
    bc = jnp.zeros((1, 9), jnp.float32)
    bb = jnp.zeros((1, 36), jnp.float32)
    return (w1, b1, wc, bc, wb, bb)


def build_anchors(H, W, stride, image_h, image_w):
    sizes = np.array([32.0, 64.0, 128.0])
    ratios = np.array([0.5, 1.0, 2.0])
    hs = (sizes[:, None] * np.sqrt(ratios)[None, :]).reshape(-1)   # 9
    ws = (sizes[:, None] / np.sqrt(ratios)[None, :]).reshape(-1)
    cy = np.arange(H, dtype=np.float32) * stride + stride / 2
    cx = np.arange(W, dtype=np.float32) * stride + stride / 2
    amap = np.zeros((H, W, 9, 4), np.float32)
    amap[..., 0] = cy[:, None, None]
    amap[..., 1] = cx[None, :, None]
    amap[..., 2] = hs[None, None, :]
    amap[..., 3] = ws[None, None, :]
    valid = ((amap[..., 0] - 0.5 * amap[..., 2] >= 0) &
             (amap[..., 1] - 0.5 * amap[..., 3] >= 0) &
             (amap[..., 0] + 0.5 * amap[..., 2] <= image_h) &
             (amap[..., 1] + 0.5 * amap[..., 3] <= image_w)).astype(np.float32)
    return jnp.asarray(amap.reshape(H, W, 36)), jnp.asarray(valid)


if __name__ == "__main__":
    key = jax.random.PRNGKey(0)
    k_feat, k_params = jax.random.split(key)

    C, H, W = 16, 16, 16
    image_shape = (3, 256, 256)          # (channels, height, width)
    max_pre, max_post = 64, 16

    feature_map = jax.random.normal(k_feat, (1, C, H, W), jnp.float32)  # NCHW
    anchor_map, anchor_valid_map = build_anchors(H, W, 16, image_shape[1],
                                                 image_shape[2])
    params = init_params(k_params, C)

    score_map, delta_map, proposals = rpn_forward(
        feature_map, anchor_map, anchor_valid_map, params,
        image_shape, max_pre, max_post)

    jax.block_until_ready((score_map, delta_map, proposals))
    assert score_map.shape == (1, H, W, 9)
    assert delta_map.shape == (1, H, W, 36)
    assert proposals.shape == (max_post, 4)
    assert bool(jnp.all((score_map >= 0.0) & (score_map <= 1.0)))
    print("KERNEL_OK")
</pallas_src>

<mosaic_0001>
module attributes {stable_mosaic.version = 11 : i64} {
  func.func @kernel(%arg0: i32, %arg1: memref<1x576x48xbf16, #tpu.memory_space<vmem>>, %arg2: memref<3x48x16xbf16, #tpu.memory_space<vmem>>, %arg3: memref<1x16xf32, #tpu.memory_space<vmem>>, %arg4: memref<16x128xbf16, #tpu.memory_space<vmem>>, %arg5: memref<1x128xf32, #tpu.memory_space<vmem>>, %arg6: memref<1x128xf32, #tpu.memory_space<vmem>>, %arg7: memref<512x128xf32, #tpu.memory_space<vmem>>) attributes {dimension_semantics = [#tpu.dimension_semantics<parallel>], iteration_bounds = array<i64: 1>, scalar_prefetch = 0 : i64, scratch_operands = 0 : i64, tpu.core_type = #tpu.core_type<tc>, window_params = [{transform_indices = @transform_0, window_bounds = array<i64: 1, 576, 48>}, {pipeline_mode = #tpu.pipeline_mode<synchronous>, transform_indices = @transform_1, window_bounds = array<i64: 3, 48, 16>}, {pipeline_mode = #tpu.pipeline_mode<synchronous>, transform_indices = @transform_2, window_bounds = array<i64: 1, 16>}, {pipeline_mode = #tpu.pipeline_mode<synchronous>, transform_indices = @transform_3, window_bounds = array<i64: 16, 128>}, {pipeline_mode = #tpu.pipeline_mode<synchronous>, transform_indices = @transform_4, window_bounds = array<i64: 1, 128>}, {pipeline_mode = #tpu.pipeline_mode<synchronous>, transform_indices = @transform_5, window_bounds = array<i64: 1, 128>}, {transform_indices = @transform_6, window_bounds = array<i64: 512, 128>}]} {
    %c0 = arith.constant 0 : index
    %c0_0 = arith.constant 0 : index
    %0 = vector.load %arg3[%c0, %c0_0] : memref<1x16xf32, #tpu.memory_space<vmem>>, vector<1x16xf32>
    %1 = vector.shape_cast %0 : vector<1x16xf32> to vector<1x16xf32>
    %2 = vector.broadcast %1 : vector<1x16xf32> to vector<512x16xf32>
    %c0_1 = arith.constant 0 : index
    %c0_2 = arith.constant 0 : index
    %c0_3 = arith.constant 0 : index
    %3 = vector.load %arg1[%c0_1, %c0_2, %c0_3] : memref<1x576x48xbf16, #tpu.memory_space<vmem>>, vector<1x512x48xbf16>
    %4 = vector.shape_cast %3 : vector<1x512x48xbf16> to vector<512x48xbf16>
    %c0_4 = arith.constant 0 : index
    %c0_5 = arith.constant 0 : index
    %c0_6 = arith.constant 0 : index
    %5 = vector.load %arg2[%c0_4, %c0_5, %c0_6] : memref<3x48x16xbf16, #tpu.memory_space<vmem>>, vector<1x48x16xbf16>
    %6 = vector.shape_cast %5 : vector<1x48x16xbf16> to vector<48x16xbf16>
    %cst = arith.constant dense<0.000000e+00> : vector<512x16xf32>
    %7 = tpu.matmul %4, %6, %cst {dimension_numbers = #tpu.dot_dimension_numbers<[1], [0], [0], [1], [0, 0, 1, 1], [], []>} : vector<512x48xbf16>, vector<48x16xbf16>, vector<512x16xf32> -> vector<512x16xf32>
    %8 = arith.addf %2, %7 : vector<512x16xf32>
    %c0_7 = arith.constant 0 : index
    %c32 = arith.constant 32 : index
    %c0_8 = arith.constant 0 : index
    %9 = vector.load %arg1[%c0_7, %c32, %c0_8] : memref<1x576x48xbf16, #tpu.memory_space<vmem>>, vector<1x512x48xbf16>
    %10 = vector.shape_cast %9 : vector<1x512x48xbf16> to vector<512x48xbf16>
    %c1 = arith.constant 1 : index
    %c0_9 = arith.constant 0 : index
    %c0_10 = arith.constant 0 : index
    %11 = vector.load %arg2[%c1, %c0_9, %c0_10] : memref<3x48x16xbf16, #tpu.memory_space<vmem>>, vector<1x48x16xbf16>
    %12 = vector.shape_cast %11 : vector<1x48x16xbf16> to vector<48x16xbf16>
    %cst_11 = arith.constant dense<0.000000e+00> : vector<512x16xf32>
    %13 = tpu.matmul %10, %12, %cst_11 {dimension_numbers = #tpu.dot_dimension_numbers<[1], [0], [0], [1], [0, 0, 1, 1], [], []>} : vector<512x48xbf16>, vector<48x16xbf16>, vector<512x16xf32> -> vector<512x16xf32>
    %14 = arith.addf %8, %13 : vector<512x16xf32>
    %c0_12 = arith.constant 0 : index
    %c64 = arith.constant 64 : index
    %c0_13 = arith.constant 0 : index
    %15 = vector.load %arg1[%c0_12, %c64, %c0_13] : memref<1x576x48xbf16, #tpu.memory_space<vmem>>, vector<1x512x48xbf16>
    %16 = vector.shape_cast %15 : vector<1x512x48xbf16> to vector<512x48xbf16>
    %c2 = arith.constant 2 : index
    %c0_14 = arith.constant 0 : index
    %c0_15 = arith.constant 0 : index
    %17 = vector.load %arg2[%c2, %c0_14, %c0_15] : memref<3x48x16xbf16, #tpu.memory_space<vmem>>, vector<1x48x16xbf16>
    %18 = vector.shape_cast %17 : vector<1x48x16xbf16> to vector<48x16xbf16>
    %cst_16 = arith.constant dense<0.000000e+00> : vector<512x16xf32>
    %19 = tpu.matmul %16, %18, %cst_16 {dimension_numbers = #tpu.dot_dimension_numbers<[1], [0], [0], [1], [0, 0, 1, 1], [], []>} : vector<512x48xbf16>, vector<48x16xbf16>, vector<512x16xf32> -> vector<512x16xf32>
    %20 = arith.addf %14, %19 : vector<512x16xf32>
    %cst_17 = arith.constant 0.000000e+00 : f32
    %21 = vector.broadcast %cst_17 : f32 to vector<512x16xf32>
    %22 = arith.maximumf %20, %21 : vector<512x16xf32>
    %23 = arith.truncf %22 : vector<512x16xf32> to vector<512x16xbf16>
    %c0_18 = arith.constant 0 : index
    %c0_19 = arith.constant 0 : index
    %24 = vector.load %arg4[%c0_18, %c0_19] : memref<16x128xbf16, #tpu.memory_space<vmem>>, vector<16x128xbf16>
    %cst_20 = arith.constant dense<0.000000e+00> : vector<512x128xf32>
    %25 = tpu.matmul %23, %24, %cst_20 {dimension_numbers = #tpu.dot_dimension_numbers<[1], [0], [0], [1], [0, 0, 1, 1], [], []>} : vector<512x16xbf16>, vector<16x128xbf16>, vector<512x128xf32> -> vector<512x128xf32>
    %c0_21 = arith.constant 0 : index
    %c0_22 = arith.constant 0 : index
    %26 = vector.load %arg5[%c0_21, %c0_22] : memref<1x128xf32, #tpu.memory_space<vmem>>, vector<1x128xf32>
    %27 = vector.broadcast %26 : vector<1x128xf32> to vector<512x128xf32>
    %28 = arith.addf %25, %27 : vector<512x128xf32>
    %cst_23 = arith.constant 5.000000e-01 : f32
    %29 = vector.broadcast %cst_23 : f32 to vector<512x128xf32>
    %30 = arith.mulf %29, %28 : vector<512x128xf32>
    %31 = math.tanh %30 : vector<512x128xf32>
    %cst_24 = arith.constant 1.000000e+00 : f32
    %32 = vector.broadcast %cst_24 : f32 to vector<512x128xf32>
    %33 = arith.addf %31, %32 : vector<512x128xf32>
    %cst_25 = arith.constant 5.000000e-01 : f32
    %34 = vector.broadcast %cst_25 : f32 to vector<512x128xf32>
    %35 = arith.mulf %34, %33 : vector<512x128xf32>
    %c0_26 = arith.constant 0 : index
    %c0_27 = arith.constant 0 : index
    %36 = vector.load %arg6[%c0_26, %c0_27] : memref<1x128xf32, #tpu.memory_space<vmem>>, vector<1x128xf32>
    %cst_28 = arith.constant 5.000000e-01 : f32
    %37 = vector.broadcast %cst_28 : f32 to vector<1x128xf32>
    %38 = arith.cmpf ogt, %36, %37 : vector<1x128xf32>
    %39 = vector.shape_cast %38 : vector<1x128xi1> to vector<1x128xi1>
    %40 = vector.broadcast %39 : vector<1x128xi1> to vector<512x128xi1>
    %41 = arith.select %40, %35, %28 : vector<512x128xi1>, vector<512x128xf32>
    %c0_29 = arith.constant 0 : index
    %c0_30 = arith.constant 0 : index
    %42 = vector.load %arg7[%c0_29, %c0_30] : memref<512x128xf32, #tpu.memory_space<vmem>>, vector<512x128xf32>
    tpu.vector_store %arg7[%c0_29, %c0_30], %41 {strides = array<i32>} : memref<512x128xf32, #tpu.memory_space<vmem>>, vector<512x128xf32>,
    return
  }
  func.func @transform_0(%arg0: i32) -> (i32, i32, i32) {
    %c0_i32 = arith.constant 0 : i32
    %c0_i32_0 = arith.constant 0 : i32
    %c0_i32_1 = arith.constant 0 : i32
    return %arg0, %c0_i32, %c0_i32_0 : i32, i32, i32
  }
  func.func @transform_1(%arg0: i32) -> (i32, i32, i32) {
    %c0_i32 = arith.constant 0 : i32
    %c0_i32_0 = arith.constant 0 : i32
    %c0_i32_1 = arith.constant 0 : i32
    %c0_i32_2 = arith.constant 0 : i32
    return %c0_i32, %c0_i32_0, %c0_i32_1 : i32, i32, i32
  }
  func.func @transform_2(%arg0: i32) -> (i32, i32) {
    %c0_i32 = arith.constant 0 : i32
    %c0_i32_0 = arith.constant 0 : i32
    %c0_i32_1 = arith.constant 0 : i32
    return %c0_i32, %c0_i32_0 : i32, i32
  }
  func.func @transform_3(%arg0: i32) -> (i32, i32) {
    %c0_i32 = arith.constant 0 : i32
    %c0_i32_0 = arith.constant 0 : i32
    %c0_i32_1 = arith.constant 0 : i32
    return %c0_i32, %c0_i32_0 : i32, i32
  }
  func.func @transform_4(%arg0: i32) -> (i32, i32) {
    %c0_i32 = arith.constant 0 : i32
    %c0_i32_0 = arith.constant 0 : i32
    %c0_i32_1 = arith.constant 0 : i32
    return %c0_i32, %c0_i32_0 : i32, i32
  }
  func.func @transform_5(%arg0: i32) -> (i32, i32) {
    %c0_i32 = arith.constant 0 : i32
    %c0_i32_0 = arith.constant 0 : i32
    %c0_i32_1 = arith.constant 0 : i32
    return %c0_i32, %c0_i32_0 : i32, i32
  }
  func.func @transform_6(%arg0: i32) -> (i32, i32) {
    %c0_i32 = arith.constant 0 : i32
    %c0_i32_0 = arith.constant 0 : i32
    return %arg0, %c0_i32 : i32, i32
  }
}

</mosaic_0001>

<bundles_post_ra>
// kernel: custom-call
= control target key start
LH: loop header
LB: loop body
LE: loop exit
PB: predicated region body
PF: predicated region fallthrough
CT: control target
= control target key end

     0   :  { %s6_s0 = inlined_call_operand.vmem [shape: pred[64], index: 0, kind: output, shape index: {}]  }

// kernel: reverse
= control target key start
LH: loop header
LB: loop body
LE: loop exit
PB: predicated region body
PF: predicated region fallthrough
CT: control target
= control target key end

     0   :  { %v2_v0 = vlaneseq  ;;  %s127_s0 = inlined_call_operand.vmem [shape: s32[64], index: 0, kind: input, shape index: {}]   ;;  %s128_s1 = inlined_call_operand.vmem [shape: s32[64], index: 1, kind: output, shape index: {}]  }
   0x2   :  { %v3_v1 = vsub.s32 63, %v2_v0 }
   0x4   :  { %4 = vset.pattern.permute.xlu0 %v3_v1 }
   0x5   :  { %v45_v2 = vld [vmem:[#allocation1] sm:$0x1]  ;;  %v22_v3 = vld [vmem:[%s127_s0] sm:$0x1]  ;;  %v60_v10 = vshrl.u32 %v2_v0, 7 }
   0x6   :  { %46 = vst [vmem:[#allocation0] sm:$0x1] %v45_v2 }
   0x7   :  { %23 = vst [vmem:[#allocation1 + $0x1] sm:$0x1] %v22_v3  ;;  %vm61_vm0 = vcmp.lt.s32.totalorder %v60_v10, 1 }
   0xd   :  { %v48_v4 = vld [vmem:[#allocation0 + $0x7] ss:$-1 sm:$0xff] }
   0xe   :  { %v49_v5 = vrot.slane %v48_v4, 7  ;;  %v42_v6 = vld [vmem:[#allocation1 + $0x1] sm:$0x1] }
   0xf   :  { %44 = vst [vmem:[#allocation0 + $0x8] sm:$0x1] %v42_v6 }
  0x10   :  { %50 = vperm.xlu0 %4, %v49_v5  }
  0x16   :  { %v55_v7 = vld [vmem:[#allocation0 + $0xf] ss:$-1 sm:$0xff] }
  0x17   :  { %v56_v8 = vrot.slane %v55_v7, 7 }
  0x19   :  { %57 = vperm.xlu0 %4, %v56_v8  }
  0x82   :  { %v51_v9 = vpop.permute.xlu0 %50 }
  0x83   :  { %52 = vst [vmem:[#allocation2] sm:$0xff] %v51_v9 }
  0x8b   :  { %v58_v11 = vpop.permute.xlu0 %57 }
  0x8c   :  { %62 = vst.msk [vmem:[#allocation2] sm:$0xff] %vm61_vm0, %v58_v11 }
  0x93   :  { %v65_v12 = vld [vmem:[#allocation2] sm:$0x1] }
  0x94   :  { %68 = vst [vmem:[#allocation3] sm:$0x1] %v65_v12 }
  0x9b   :  { %v85_v13 = vld [vmem:[#allocation3] sm:$0x1] }
  0x9c   :  { %86 = vst [vmem:[%s128_s1] sm:$0x1] %v85_v13 }

// kernel: rpn_forward.1
= control target key start
LH: loop header
LB: loop body
LE: loop exit
PB: predicated region body
PF: predicated region fallthrough
CT: control target
= control target key end

     0   :  { %vm276_vm0 = vcmask 392192   ;;  %vm1870_vm1 = vcmask 130048   ;;  %s4291_s1 = inlined_call_operand.vmem [shape: bf16[3,48,16], index: 1, kind: input, shape index: {}]   ;;  %s4292_s2 = inlined_call_operand.vmem [shape: f32[1,16], index: 2, kind: input, shape index: {}]   ;;  %s4293_s0 = inlined_call_operand.vmem [shape: bf16[1,576,48], index: 0, kind: input, shape index: {}]   ;;  %s4294_s3 = inlined_call_operand.vmem [shape: bf16[16,128], index: 3, kind: input, shape index: {}]   ;;  %s4295_s4 = inlined_call_operand.vmem [shape: f32[1,128], index: 4, kind: input, shape index: {}]   ;;  %s4296_s5 = inlined_call_operand.vmem [shape: f32[1,128], index: 5, kind: input, shape index: {}]   ;;  %s4297_s6 = inlined_call_operand.vmem [shape: f32[512,128], index: 6, kind: output, shape index: {}]  }
   0x1   :  { %v3127_v0 = vld [vmem:[%s4291_s1 + $0x10] sm:$0xff]  ;;  %v3162_v1 = vld [vmem:[%s4291_s1 + $0x28] sm:$0xff]  ;;  %v3197_v2 = vld [vmem:[%s4291_s1 + $0x40] sm:$0xff] }
   0x2   :  { %378 = vmatpush.bf16.msra.mxu0 %v3127_v0  ;;  %956 = vmatpush.bf16.msra.mxu1 %v3162_v1  ;;  %v3126_v3 = vld [vmem:[%s4291_s1 + $0x8] sm:$0xff]  ;;  %v3161_v4 = vld [vmem:[%s4291_s1 + $0x20] sm:$0xff]  ;;  %v3196_v5 = vld [vmem:[%s4291_s1 + $0x38] sm:$0xff] }
   0x3   :  { %1534 = vmatpush.bf16.msra.mxu2 %v3197_v2  ;;  %v3125_v6 = vld [vmem:[%s4291_s1] sm:$0xff]  ;;  %v3160_v7 = vld [vmem:[%s4291_s1 + $0x18] sm:$0xff]  ;;  %v3195_v8 = vld [vmem:[%s4291_s1 + $0x30] sm:$0xff] }
   0x4   :  { %v3093_v9 = vld [vmem:[%s4293_s0] sm:$0xff]  ;;  %v3128_v10 = vld [vmem:[%s4293_s0 + $0x10] sm:$0xff]  ;;  %v3094_v12 = vld [vmem:[%s4293_s0 + $0x8] sm:$0xff] }
   0x5   :  { %v3163_v11 = vld [vmem:[%s4293_s0 + $0x20] sm:$0xff]  ;;  %v3129_v13 = vld [vmem:[%s4293_s0 + $0x18] sm:$0xff]  ;;  %v3164_v14 = vld [vmem:[%s4293_s0 + $0x28] sm:$0xff] }
   0x6   :  { %379 = vmatpush.bf16.msra.mxu0 %v3126_v3  ;;  %957 = vmatpush.bf16.msra.mxu1 %v3161_v4  ;;  %v3095_v15 = vld [vmem:[%s4293_s0 + $0x10] sm:$0xff]  ;;  %v3130_v16 = vld [vmem:[%s4293_s0 + $0x20] sm:$0xff]  ;;  %v3096_v18 = vld [vmem:[%s4293_s0 + $0x18] sm:$0xff] }
   0x7   :  { %1535 = vmatpush.bf16.msra.mxu2 %v3196_v5  ;;  %v3165_v17 = vld [vmem:[%s4293_s0 + $0x30] sm:$0xff]  ;;  %v3131_v19 = vld [vmem:[%s4293_s0 + $0x28] sm:$0xff]  ;;  %v3166_v20 = vld [vmem:[%s4293_s0 + $0x38] sm:$0xff] }
   0x8   :  { %v3097_v21 = vld [vmem:[%s4293_s0 + $0x20] sm:$0xff]  ;;  %v3132_v22 = vld [vmem:[%s4293_s0 + $0x30] sm:$0xff]  ;;  %v3098_v24 = vld [vmem:[%s4293_s0 + $0x28] sm:$0xff] }
   0x9   :  { %v3167_v23 = vld [vmem:[%s4293_s0 + $0x40] sm:$0xff]  ;;  %v3133_v25 = vld [vmem:[%s4293_s0 + $0x38] sm:$0xff]  ;;  %v3168_v26 = vld [vmem:[%s4293_s0 + $0x48] sm:$0xff] }
   0xa   :  { %380 = vmatpush.bf16.msra.mxu0 %v3125_v6  ;;  %958 = vmatpush.bf16.msra.mxu1 %v3160_v7  ;;  %v3099_v27 = vld [vmem:[%s4293_s0 + $0x30] sm:$0xff]  ;;  %v3134_v28 = vld [vmem:[%s4293_s0 + $0x40] sm:$0xff]  ;;  %v3100_v30 = vld [vmem:[%s4293_s0 + $0x38] sm:$0xff] }
   0xb   :  { %1536 = vmatpush.bf16.msra.mxu2 %v3195_v8  ;;  %v3169_v29 = vld [vmem:[%s4293_s0 + $0x50] sm:$0xff]  ;;  %v3135_v31 = vld [vmem:[%s4293_s0 + $0x48] sm:$0xff]  ;;  %v3170_v32 = vld [vmem:[%s4293_s0 + $0x58] sm:$0xff] }
   0xc   :  { %v3198_v33 = vld [vmem:[%s4294_s3] sm:$0xff]  ;;  %v3136_v35 = vld [vmem:[%s4293_s0 + $0x50] sm:$0xff]  ;;  %v3102_v49 = vld [vmem:[%s4293_s0 + $0x48] sm:$0xff] }
   0xd   :  { %2669 = vmatmul.msk.bf16.vlgmr.msra.gmra.mxu0 %vm276_vm0, %v3093_v9  ;;  %2847 = vmatmul.msk.bf16.vlgmr.msra.gmra.mxu1 %vm276_vm0, %v3128_v10  ;;  %v3101_v34 = vld [vmem:[%s4293_s0 + $0x40] sm:$0xff]  ;;  %v3137_v50 = vld [vmem:[%s4293_s0 + $0x58] sm:$0xff]  ;;  %v3172_v54 = vld [vmem:[%s4293_s0 + $0x68] sm:$0xff] }
   0xe   :  { %3025 = vmatmul.msk.bf16.vlgmr.msra.gmra.mxu2 %vm276_vm0, %v3163_v11  ;;  %1974 = vmatpush.bf16.msra.mxu3 %v3198_v33  ;;  %v3171_v38 = vld [vmem:[%s4293_s0 + $0x60] sm:$0xff]  ;;  %v3103_v3 = vld [vmem:[%s4293_s0 + $0x50] sm:$0xff] }
   0xf   :  { %v3507_v39 = vld [vmem:[%s4292_s2] ss:$0 sm:$0xff]  ;;  %v3173_v8 = vld [vmem:[%s4293_s0 + $0x70] sm:$0xff] }
  0x10   :  { %v3138_v4 = vld [vmem:[%s4293_s0 + $0x60] sm:$0xff] }
  0x1d   :  { %2670 = vmatmul.msk.bf16.gmra.mxu0 %vm276_vm0, %v3094_v12  ;;  %2848 = vmatmul.msk.bf16.gmra.mxu1 %vm276_vm0, %v3129_v13 }
  0x1e   :  { %3026 = vmatmul.msk.bf16.gmra.mxu2 %vm276_vm0, %v3164_v14 }
  0x2d   :  { %2671 = vmatmul.msk.bf16.gmra.mxu0 %vm276_vm0, %v3095_v15  ;;  %2849 = vmatmul.msk.bf16.gmra.mxu1 %vm276_vm0, %v3130_v16 }
  0x2e   :  { %3027 = vmatmul.msk.bf16.gmra.mxu2 %vm276_vm0, %v3165_v17 }
  0x3d   :  { %2672 = vmatmul.msk.bf16.gmra.mxu0 %vm276_vm0, %v3096_v18  ;;  %2850 = vmatmul.msk.bf16.gmra.mxu1 %vm276_vm0, %v3131_v19 }
  0x3e   :  { %3028 = vmatmul.msk.bf16.gmra.mxu2 %vm276_vm0, %v3166_v20 }
  0x4d   :  { %2673 = vmatmul.msk.bf16.gmra.mxu0 %vm276_vm0, %v3097_v21  ;;  %2851 = vmatmul.msk.bf16.gmra.mxu1 %vm276_vm0, %v3132_v22  ;;  %v3104_v21 = vld [vmem:[%s4293_s0 + $0x58] sm:$0xff]  ;;  %v3139_v22 = vld [vmem:[%s4293_s0 + $0x68] sm:$0xff] }
  0x4e   :  { %3029 = vmatmul.msk.bf16.gmra.mxu2 %vm276_vm0, %v3167_v23 }
  0x5d   :  { %2674 = vmatmul.msk.bf16.gmra.mxu0 %vm276_vm0, %v3098_v24  ;;  %2852 = vmatmul.msk.bf16.gmra.mxu1 %vm276_vm0, %v3133_v25 }
  0x5e   :  { %3030 = vmatmul.msk.bf16.gmra.mxu2 %vm276_vm0, %v3168_v26  ;;  %v3174_v26 = vld [vmem:[%s4293_s0 + $0x78] sm:$0xff] }
  0x6d   :  { %2675 = vmatmul.msk.bf16.gmra.mxu0 %vm276_vm0, %v3099_v27  ;;  %2853 = vmatmul.msk.bf16.gmra.mxu1 %vm276_vm0, %v3134_v28 }
  0x6e   :  { %3031 = vmatmul.msk.bf16.gmra.mxu2 %vm276_vm0, %v3169_v29 }
  0x7d   :  { %2676 = vmatmul.msk.bf16.gmra.mxu0 %vm276_vm0, %v3100_v30  ;;  %2854 = vmatmul.msk.bf16.gmra.mxu1 %vm276_vm0, %v3135_v31 }
  0x7e   :  { %3032 = vmatmul.msk.bf16.gmra.mxu2 %vm276_vm0, %v3170_v32 }
  0x8a   :  { %v382_v36 = vpop.f32.mrf.mxu0  ;;  %v960_v37 = vpop.f32.mrf.mxu1 }
  0x8b   :  { %v542_v40 = vadd.f32 %v3507_v39, %v382_v36 }
  0x8d   :  { %2677 = vmatmul.msk.bf16.gmra.mxu0 %vm276_vm0, %v3101_v34  ;;  %2855 = vmatmul.msk.bf16.gmra.mxu1 %vm276_vm0, %v3136_v35  ;;  %v1120_v44 = vadd.f32 %v960_v37, %v542_v40  ;;  %v3105_v40 = vld [vmem:[%s4293_s0 + $0x60] sm:$0xff] }
  0x8e   :  { %3033 = vmatmul.msk.bf16.gmra.mxu2 %vm276_vm0, %v3171_v38 }
  0x91   :  { %v1538_v41 = vpop.f32.mrf.mxu2 }
  0x92   :  { %v384_v42 = vpop.f32.mrf.mxu0  ;;  %v962_v43 = vpop.f32.mrf.mxu1  ;;  %v1698_v46 = vadd.f32 %v1538_v41, %v1120_v44  ;;  %v3140_v41 = vld [vmem:[%s4293_s0 + $0x70] sm:$0xff] }
  0x93   :  { %v543_v45 = vadd.f32 %v3507_v39, %v384_v42 }
  0x94   :  { %v1762_v55 = vmax.f32 %v1698_v46, 0.0 }
  0x95   :  { %v1121_v47 = vadd.f32 %v962_v43, %v543_v45  ;;  %v3175_v45 = vld [vmem:[%s4293_s0 + $0x80] sm:$0xff] }
  0x99   :  { %v1540_v48 = vpop.f32.mrf.mxu2 }
  0x9a   :  { %v1699_v51 = vadd.f32 %v1540_v48, %v1121_v47  ;;  %v387_v52 = vpop.f32.mrf.mxu0  ;;  %v965_v53 = vpop.f32.mrf.mxu1 }
  0x9b   :  { %v544_v58 = vadd.f32 %v3507_v39, %v387_v52 }
  0x9c   :  { %v1763_v56 = vmax.f32 %v1699_v51, 0.0 }
  0x9d   :  { %2678 = vmatmul.msk.bf16.gmra.mxu0 %vm276_vm0, %v3102_v49  ;;  %2856 = vmatmul.msk.bf16.gmra.mxu1 %vm276_vm0, %v3137_v50  ;;  %v1122_v62 = vadd.f32 %v965_v53, %v544_v58  ;;  %v3106_v58 = vld [vmem:[%s4293_s0 + $0x68] sm:$0xff] }
  0x9e   :  { %3034 = vmatmul.msk.bf16.gmra.mxu2 %vm276_vm0, %v3172_v54  ;;  %v1826_v57 = vpack.c.bf16 %v1763_v56, %v1762_v55 }
  0xa0   :  { %3061 = vmatmul.msk.bf16.vlgmr.msra.gmra.mxu3 %vm1870_vm1, %v1826_v57 }
  0xa1   :  { %v1543_v59 = vpop.f32.mrf.mxu2 }
  0xa2   :  { %v389_v60 = vpop.f32.mrf.mxu0  ;;  %v967_v61 = vpop.f32.mrf.mxu1  ;;  %v1700_v0 = vadd.f32 %v1543_v59, %v1122_v62  ;;  %v3141_v59 = vld [vmem:[%s4293_s0 + $0x78] sm:$0xff] }
  0xa3   :  { %v545_v63 = vadd.f32 %v3507_v39, %v389_v60 }
  0xa4   :  { %v1764_v9 = vmax.f32 %v1700_v0, 0.0 }
  0xa5   :  { %v1123_v1 = vadd.f32 %v967_v61, %v545_v63  ;;  %v3176_v63 = vld [vmem:[%s4293_s0 + $0x88] sm:$0xff] }
  0xa9   :  { %v1545_v2 = vpop.f32.mrf.mxu2 }
  0xaa   :  { %v1701_v5 = vadd.f32 %v1545_v2, %v1123_v1  ;;  %v392_v6 = vpop.f32.mrf.mxu0  ;;  %v970_v7 = vpop.f32.mrf.mxu1 }
  0xab   :  { %v546_v12 = vadd.f32 %v3507_v39, %v392_v6 }
  0xac   :  { %v1765_v10 = vmax.f32 %v1701_v5, 0.0 }
  0xad   :  { %2679 = vmatmul.msk.bf16.gmra.mxu0 %vm276_vm0, %v3103_v3  ;;  %2857 = vmatmul.msk.bf16.gmra.mxu1 %vm276_vm0, %v3138_v4  ;;  %v1124_v16 = vadd.f32 %v970_v7, %v546_v12  ;;  %v3107_v12 = vld [vmem:[%s4293_s0 + $0x70] sm:$0xff] }
  0xae   :  { %3035 = vmatmul.msk.bf16.gmra.mxu2 %vm276_vm0, %v3173_v8  ;;  %v1827_v11 = vpack.c.bf16 %v1765_v10, %v1764_v9 }
  0xb0   :  { %3062 = vmatmul.msk.bf16.gmra.mxu3 %vm1870_vm1, %v1827_v11 }
  0xb1   :  { %v1548_v13 = vpop.f32.mrf.mxu2 }
  0xb2   :  { %v394_v14 = vpop.f32.mrf.mxu0  ;;  %v972_v15 = vpop.f32.mrf.mxu1  ;;  %v1702_v18 = vadd.f32 %v1548_v13, %v1124_v16  ;;  %v3142_v13 = vld [vmem:[%s4293_s0 + $0x80] sm:$0xff] }
  0xb3   :  { %v547_v17 = vadd.f32 %v3507_v39, %v394_v14 }
  0xb4   :  { %v1766_v27 = vmax.f32 %v1702_v18, 0.0 }
  0xb5   :  { %v1125_v19 = vadd.f32 %v972_v15, %v547_v17  ;;  %v3177_v17 = vld [vmem:[%s4293_s0 + $0x90] sm:$0xff] }
  0xb9   :  { %v1550_v20 = vpop.f32.mrf.mxu2 }
  0xba   :  { %v1703_v23 = vadd.f32 %v1550_v20, %v1125_v19  ;;  %v397_v24 = vpop.f32.mrf.mxu0  ;;  %v975_v25 = vpop.f32.mrf.mxu1 }
  0xbb   :  { %v548_v30 = vadd.f32 %v3507_v39, %v397_v24 }
  0xbc   :  { %v1767_v28 = vmax.f32 %v1703_v23, 0.0 }
  0xbd   :  { %2680 = vmatmul.msk.bf16.gmra.mxu0 %vm276_vm0, %v3104_v21  ;;  %2858 = vmatmul.msk.bf16.gmra.mxu1 %vm276_vm0, %v3139_v22  ;;  %v1126_v34 = vadd.f32 %v975_v25, %v548_v30  ;;  %v3108_v30 = vld [vmem:[%s4293_s0 + $0x78] sm:$0xff] }
  0xbe   :  { %3036 = vmatmul.msk.bf16.gmra.mxu2 %vm276_vm0, %v3174_v26  ;;  %v1828_v29 = vpack.c.bf16 %v1767_v28, %v1766_v27 }
  0xc0   :  { %3063 = vmatmul.msk.bf16.gmra.mxu3 %vm1870_vm1, %v1828_v29 }
  0xc1   :  { %v1553_v31 = vpop.f32.mrf.mxu2 }
  0xc2   :  { %v399_v32 = vpop.f32.mrf.mxu0  ;;  %v977_v33 = vpop.f32.mrf.mxu1  ;;  %v1704_v36 = vadd.f32 %v1553_v31, %v1126_v34  ;;  %v3143_v31 = vld [vmem:[%s4293_s0 + $0x88] sm:$0xff] }
  0xc3   :  { %v549_v35 = vadd.f32 %v3507_v39, %v399_v32 }
  0xc4   :  { %v1768_v46 = vmax.f32 %v1704_v36, 0.0 }
  0xc5   :  { %v1127_v37 = vadd.f32 %v977_v33, %v549_v35  ;;  %v3178_v35 = vld [vmem:[%s4293_s0 + $0x98] sm:$0xff] }
  0xc9   :  { %v1555_v38 = vpop.f32.mrf.mxu2 }
  0xca   :  { %v1705_v42 = vadd.f32 %v1555_v38, %v1127_v37  ;;  %v402_v43 = vpop.f32.mrf.mxu0  ;;  %v980_v44 = vpop.f32.mrf.mxu1 }
  0xcb   :  { %v550_v49 = vadd.f32 %v3507_v39, %v402_v43 }
  0xcc   :  { %v1769_v47 = vmax.f32 %v1705_v42, 0.0 }
  0xcd   :  { %2681 = vmatmul.msk.bf16.gmra.mxu0 %vm276_vm0, %v3105_v40  ;;  %2859 = vmatmul.msk.bf16.gmra.mxu1 %vm276_vm0, %v3140_v41  ;;  %v1128_v53 = vadd.f32 %v980_v44, %v550_v49  ;;  %v3109_v49 = vld [vmem:[%s4293_s0 + $0x80] sm:$0xff] }
  0xce   :  { %3037 = vmatmul.msk.bf16.gmra.mxu2 %vm276_vm0, %v3175_v45  ;;  %v1829_v48 = vpack.c.bf16 %v1769_v47, %v1768_v46 }
  0xd0   :  { %3064 = vmatmul.msk.bf16.gmra.mxu3 %vm1870_vm1, %v1829_v48 }
  0xd1   :  { %v1558_v50 = vpop.f32.mrf.mxu2 }
  0xd2   :  { %v404_v51 = vpop.f32.mrf.mxu0  ;;  %v982_v52 = vpop.f32.mrf.mxu1  ;;  %v1706_v55 = vadd.f32 %v1558_v50, %v1128_v53  ;;  %v3144_v50 = vld [vmem:[%s4293_s0 + $0x90] sm:$0xff] }
  0xd3   :  { %v551_v54 = vadd.f32 %v3507_v39, %v404_v51 }
  0xd4   :  { %v1770_v0 = vmax.f32 %v1706_v55, 0.0 }
  0xd5   :  { %v1129_v56 = vadd.f32 %v982_v52, %v551_v54  ;;  %v3179_v54 = vld [vmem:[%s4293_s0 + $0xa0] sm:$0xff] }
  0xd9   :  { %v1560_v57 = vpop.f32.mrf.mxu2 }
  0xda   :  { %v1707_v60 = vadd.f32 %v1560_v57, %v1129_v56  ;;  %v407_v61 = vpop.f32.mrf.mxu0  ;;  %v985_v62 = vpop.f32.mrf.mxu1 }
  0xdb   :  { %v552_v3 = vadd.f32 %v3507_v39, %v407_v61 }
  0xdc   :  { %v1771_v1 = vmax.f32 %v1707_v60, 0.0 }
  0xdd   :  { %2682 = vmatmul.msk.bf16.gmra.mxu0 %vm276_vm0, %v3106_v58  ;;  %2860 = vmatmul.msk.bf16.gmra.mxu1 %vm276_vm0, %v3141_v59  ;;  %v1130_v7 = vadd.f32 %v985_v62, %v552_v3  ;;  %v3110_v3 = vld [vmem:[%s4293_s0 + $0x88] sm:$0xff] }
  0xde   :  { %3038 = vmatmul.msk.bf16.gmra.mxu2 %vm276_vm0, %v3176_v63  ;;  %v1830_v2 = vpack.c.bf16 %v1771_v1, %v1770_v0 }
  0xe0   :  { %3065 = vmatmul.msk.bf16.gmra.mxu3 %vm1870_vm1, %v1830_v2 }
  0xe1   :  { %v1563_v4 = vpop.f32.mrf.mxu2 }
  0xe2   :  { %v409_v5 = vpop.f32.mrf.mxu0  ;;  %v987_v6 = vpop.f32.mrf.mxu1  ;;  %v1708_v9 = vadd.f32 %v1563_v4, %v1130_v7  ;;  %v3145_v4 = vld [vmem:[%s4293_s0 + $0x98] sm:$0xff] }
  0xe3   :  { %v553_v8 = vadd.f32 %v3507_v39, %v409_v5 }
  0xe4   :  { %v1772_v18 = vmax.f32 %v1708_v9, 0.0 }
  0xe5   :  { %v1131_v10 = vadd.f32 %v987_v6, %v553_v8  ;;  %v3180_v8 = vld [vmem:[%s4293_s0 + $0xa8] sm:$0xff] }
  0xe9   :  { %v1565_v11 = vpop.f32.mrf.mxu2 }
  0xea   :  { %v1709_v14 = vadd.f32 %v1565_v11, %v1131_v10  ;;  %v412_v15 = vpop.f32.mrf.mxu0  ;;  %v990_v16 = vpop.f32.mrf.mxu1 }
  0xeb   :  { %v554_v21 = vadd.f32 %v3507_v39, %v412_v15 }
  0xec   :  { %v1773_v19 = vmax.f32 %v1709_v14, 0.0 }
  0xed   :  { %2683 = vmatmul.msk.bf16.gmra.mxu0 %vm276_vm0, %v3107_v12  ;;  %2861 = vmatmul.msk.bf16.gmra.mxu1 %vm276_vm0, %v3142_v13  ;;  %v1132_v25 = vadd.f32 %v990_v16, %v554_v21  ;;  %v3651_v13 = vld [vmem:[%s4295_s4] ss:$0 sm:$0xff] }
  0xee   :  { %3039 = vmatmul.msk.bf16.gmra.mxu2 %vm276_vm0, %v3177_v17  ;;  %v1831_v20 = vpack.c.bf16 %v1773_v19, %v1772_v18  ;;  %v2392_v18 = vld [vmem:[%s4296_s5] sm:$0x1] }
  0xef   :  { %vm2393_vm2 = vcmp.gt.f32.partialorder %v2392_v18, 0.5 }
  0xf0   :  { %3066 = vmatmul.msk.bf16.gmra.mxu3 %vm1870_vm1, %v1831_v20 }
  0xf1   :  { %v1568_v22 = vpop.f32.mrf.mxu2 }
  0xf2   :  { %v414_v23 = vpop.f32.mrf.mxu0  ;;  %v992_v24 = vpop.f32.mrf.mxu1  ;;  %v1710_v27 = vadd.f32 %v1568_v22, %v1132_v25  ;;  %v3333_v25 = vmov 0  }
  0xf3   :  { %v555_v26 = vadd.f32 %v3507_v39, %v414_v23 }
  0xf4   :  { %v1774_v36 = vmax.f32 %v1710_v27, 0.0 }
  0xf5   :  { %v1133_v28 = vadd.f32 %v992_v24, %v555_v26  ;;  %v2394_v26 = vsel %vm2393_vm2, 1, %v3333_v25 }
  0xf9   :  { %v1570_v29 = vpop.f32.mrf.mxu2 }
  0xfa   :  { %v1711_v32 = vadd.f32 %v1570_v29, %v1133_v28  ;;  %v417_v33 = vpop.f32.mrf.mxu0  ;;  %v995_v34 = vpop.f32.mrf.mxu1  ;;  %v3111_v28 = vld [vmem:[%s4293_s0 + $0x90] sm:$0xff]  ;;  %v3146_v29 = vld [vmem:[%s4293_s0 + $0xa0] sm:$0xff] }
  0xfb   :  { %v556_v40 = vadd.f32 %v3507_v39, %v417_v33  ;;  %v3181_v33 = vld [vmem:[%s4293_s0 + $0xb0] sm:$0xff] }
  0xfc   :  { %v1775_v37 = vmax.f32 %v1711_v32, 0.0 }
  0xfd   :  { %2684 = vmatmul.msk.bf16.gmra.mxu0 %vm276_vm0, %v3108_v30  ;;  %2862 = vmatmul.msk.bf16.gmra.mxu1 %vm276_vm0, %v3143_v31  ;;  %v1134_v44 = vadd.f32 %v995_v34, %v556_v40 }
  0xfe   :  { %3040 = vmatmul.msk.bf16.gmra.mxu2 %vm276_vm0, %v3178_v35  ;;  %v1832_v38 = vpack.c.bf16 %v1775_v37, %v1774_v36  ;;  %v2395_v36 = vperm.slane %v2394_v26, 0 }
 0x100   :  { %3067 = vmatmul.msk.bf16.gmra.mxu3 %vm1870_vm1, %v1832_v38  ;;  %vm3671_vm3 = vcmp.eq.s32.totalorder %v2395_v36, 1  ;;  %v3183_v36 = vld [vmem:[%s4293_s0 + $0xc0] sm:$0xff] }
 0x101   :  { %v1573_v41 = vpop.f32.mrf.mxu2 }
 0x102   :  { %v419_v42 = vpop.f32.mrf.mxu0  ;;  %v997_v43 = vpop.f32.mrf.mxu1  ;;  %v1712_v46 = vadd.f32 %v1573_v41, %v1134_v44 }
 0x103   :  { %v557_v45 = vadd.f32 %v3507_v39, %v419_v42 }
 0x104   :  { %v1776_v55 = vmax.f32 %v1712_v46, 0.0 }
 0x105   :  { %v1135_v47 = vadd.f32 %v997_v43, %v557_v45 }
 0x109   :  { %v1575_v48 = vpop.f32.mrf.mxu2 }
 0x10a   :  { %v1713_v51 = vadd.f32 %v1575_v48, %v1135_v47  ;;  %v422_v52 = vpop.f32.mrf.mxu0  ;;  %v1000_v53 = vpop.f32.mrf.mxu1 }
 0x10b   :  { %v558_v58 = vadd.f32 %v3507_v39, %v422_v52 }
 0x10c   :  { %v1777_v56 = vmax.f32 %v1713_v51, 0.0 }
 0x10d   :  { %2685 = vmatmul.msk.bf16.gmra.mxu0 %vm276_vm0, %v3109_v49  ;;  %2863 = vmatmul.msk.bf16.gmra.mxu1 %vm276_vm0, %v3144_v50  ;;  %v1136_v62 = vadd.f32 %v1000_v53, %v558_v58 }
 0x10e   :  { %3041 = vmatmul.msk.bf16.gmra.mxu2 %vm276_vm0, %v3179_v54  ;;  %v1833_v57 = vpack.c.bf16 %v1777_v56, %v1776_v55 }
 0x110   :  { %3068 = vmatmul.msk.bf16.gmra.mxu3 %vm1870_vm1, %v1833_v57 }
 0x111   :  { %v1578_v59 = vpop.f32.mrf.mxu2 }
 0x112   :  { %v424_v60 = vpop.f32.mrf.mxu0  ;;  %v1002_v61 = vpop.f32.mrf.mxu1  ;;  %v1714_v0 = vadd.f32 %v1578_v59, %v1136_v62  ;;  %v3112_v62 = vld [vmem:[%s4293_s0 + $0x98] sm:$0xff] }
 0x113   :  { %v559_v63 = vadd.f32 %v3507_v39, %v424_v60 }
 0x114   :  { %v1778_v9 = vmax.f32 %v1714_v0, 0.0 }
 0x115   :  { %v1137_v1 = vadd.f32 %v1002_v61, %v559_v63  ;;  %v3147_v63 = vld [vmem:[%s4293_s0 + $0xa8] sm:$0xff] }
 0x119   :  { %v1580_v2 = vpop.f32.mrf.mxu2 }
 0x11a   :  { %v1715_v5 = vadd.f32 %v1580_v2, %v1137_v1  ;;  %v427_v6 = vpop.f32.mrf.mxu0  ;;  %v1005_v7 = vpop.f32.mrf.mxu1 }
 0x11b   :  { %v560_v12 = vadd.f32 %v3507_v39, %v427_v6 }
 0x11c   :  { %v1779_v10 = vmax.f32 %v1715_v5, 0.0 }
 0x11d   :  { %2686 = vmatmul.msk.bf16.gmra.mxu0 %vm276_vm0, %v3110_v3  ;;  %2864 = vmatmul.msk.bf16.gmra.mxu1 %vm276_vm0, %v3145_v4  ;;  %v1138_v19 = vadd.f32 %v1005_v7, %v560_v12  ;;  %v3182_v3 = vld [vmem:[%s4293_s0 + $0xb8] sm:$0xff] }
 0x11e   :  { %3042 = vmatmul.msk.bf16.gmra.mxu2 %vm276_vm0, %v3180_v8  ;;  %v1834_v11 = vpack.c.bf16 %v1779_v10, %v1778_v9 }
 0x120   :  { %3069 = vmatmul.msk.bf16.gmra.mxu3 %vm1870_vm1, %v1834_v11 }
 0x121   :  { %v1583_v14 = vpop.f32.mrf.mxu2 }
 0x122   :  { %v429_v15 = vpop.f32.mrf.mxu0  ;;  %v1007_v16 = vpop.f32.mrf.mxu1  ;;  %v1716_v23 = vadd.f32 %v1583_v14, %v1138_v19 }
 0x123   :  { %v1976_v17 = vpop.f32.mrf.mxu3  ;;  %v561_v20 = vadd.f32 %v3507_v39, %v429_v15 }
 0x124   :  { %v1977_v21 = vadd.f32 %v3651_v13, %v1976_v17  ;;  %v1780_v35 = vmax.f32 %v1716_v23, 0.0 }
 0x125   :  { %v1139_v24 = vadd.f32 %v1007_v16, %v561_v20 }
 0x126   :  { %v2136_v22 = vmul.f32 0.5, %v1977_v21 }
 0x128   :  { %3202 = vtanh.f32 %v2136_v22 }
 0x129   :  { %v1585_v27 = vpop.f32.mrf.mxu2 }
 0x12a   :  { %v1717_v30 = vadd.f32 %v1585_v27, %v1139_v24  ;;  %v432_v31 = vpop.f32.mrf.mxu0  ;;  %v1010_v32 = vpop.f32.mrf.mxu1 }
 0x12b   :  { %v1978_v34 = vpop.f32.mrf.mxu3  ;;  %v562_v45 = vadd.f32 %v3507_v39, %v432_v31  ;;  %v3113_v31 = vld [vmem:[%s4293_s0 + $0xa0] sm:$0xff] }
 0x12c   :  { %v1781_v37 = vmax.f32 %v1717_v30, 0.0  ;;  %v1979_v38 = vadd.f32 %v3651_v13, %v1978_v34 }
 0x12d   :  { %2687 = vmatmul.msk.bf16.gmra.mxu0 %vm276_vm0, %v3111_v28  ;;  %2865 = vmatmul.msk.bf16.gmra.mxu1 %vm276_vm0, %v3146_v29  ;;  %v1140_v52 = vadd.f32 %v1010_v32, %v562_v45  ;;  %v3148_v32 = vld [vmem:[%s4293_s0 + $0xb0] sm:$0xff] }
 0x12e   :  { %v3203_v40 = vpop.eup %3202  ;;  %v2137_v41 = vmul.f32 0.5, %v1979_v38  ;;  %3043 = vmatmul.msk.bf16.gmra.mxu2 %vm276_vm0, %v3181_v33  ;;  %v1835_v42 = vpack.c.bf16 %v1781_v37, %v1780_v35 }
 0x12f   :  { %v2264_v43 = vadd.f32 1.0, %v3203_v40 }
 0x130   :  { %3204 = vtanh.f32 %v2137_v41  ;;  %3070 = vmatmul.msk.bf16.gmra.mxu3 %vm1870_vm1, %v1835_v42 }
 0x131   :  { %v2328_v46 = vmul.f32 0.5, %v2264_v43  ;;  %v1588_v47 = vpop.f32.mrf.mxu2 }
 0x132   :  { %v434_v48 = vpop.f32.mrf.mxu0  ;;  %v1012_v49 = vpop.f32.mrf.mxu1  ;;  %v1718_v58 = vadd.f32 %v1588_v47, %v1140_v52 }
 0x133   :  { %v2397_v50 = vsel %vm3671_vm3, %v2328_v46, %v1977_v21  ;;  %v1981_v51 = vpop.f32.mrf.mxu3  ;;  %v563_v53 = vadd.f32 %v3507_v39, %v434_v48 }
 0x134   :  { %2461 = vst [vmem:[%s4297_s6] sm:$0xff] %v2397_v50  ;;  %v1982_v54 = vadd.f32 %v3651_v13, %v1981_v51  ;;  %v1782_v6 = vmax.f32 %v1718_v58, 0.0 }
 0x135   :  { %v1141_v59 = vadd.f32 %v1012_v49, %v563_v53 }
 0x136   :  { %v3205_v55 = vpop.eup %3204  ;;  %v2138_v56 = vmul.f32 0.5, %v1982_v54 }
 0x137   :  { %v2265_v57 = vadd.f32 1.0, %v3205_v55 }
 0x138   :  { %3206 = vtanh.f32 %v2138_v56 }
 0x139   :  { %v2329_v60 = vmul.f32 0.5, %v2265_v57  ;;  %v1590_v61 = vpop.f32.mrf.mxu2 }
 0x13a   :  { %v1719_v0 = vadd.f32 %v1590_v61, %v1141_v59  ;;  %v437_v1 = vpop.f32.mrf.mxu0  ;;  %v1015_v2 = vpop.f32.mrf.mxu1 }
 0x13b   :  { %v2398_v4 = vsel %vm3671_vm3, %v2329_v60, %v1979_v38  ;;  %v1983_v5 = vpop.f32.mrf.mxu3  ;;  %v564_v14 = vadd.f32 %v3507_v39, %v437_v1  ;;  %v3114_v1 = vld [vmem:[%s4293_s0 + $0xa8] sm:$0xff] }
 0x13c   :  { %2462 = vst [vmem:[%s4297_s6 + $0x8] sm:$0xff] %v2398_v4  ;;  %v1783_v7 = vmax.f32 %v1719_v0, 0.0  ;;  %v1984_v8 = vadd.f32 %v3651_v13, %v1983_v5 }
 0x13d   :  { %2688 = vmatmul.msk.bf16.gmra.mxu0 %vm276_vm0, %v3112_v62  ;;  %2866 = vmatmul.msk.bf16.gmra.mxu1 %vm276_vm0, %v3147_v63  ;;  %v1142_v21 = vadd.f32 %v1015_v2, %v564_v14  ;;  %v3149_v2 = vld [vmem:[%s4293_s0 + $0xb8] sm:$0xff] }
 0x13e   :  { %v3207_v9 = vpop.eup %3206  ;;  %v2139_v10 = vmul.f32 0.5, %v1984_v8  ;;  %3044 = vmatmul.msk.bf16.gmra.mxu2 %vm276_vm0, %v3182_v3  ;;  %v1836_v11 = vpack.c.bf16 %v1783_v7, %v1782_v6  ;;  %v3184_v6 = vld [vmem:[%s4293_s0 + $0xc8] sm:$0xff] }
 0x13f   :  { %v2266_v12 = vadd.f32 1.0, %v3207_v9 }
 0x140   :  { %3208 = vtanh.f32 %v2139_v10  ;;  %3071 = vmatmul.msk.bf16.gmra.mxu3 %vm1870_vm1, %v1836_v11 }
 0x141   :  { %v2330_v15 = vmul.f32 0.5, %v2266_v12  ;;  %v1593_v16 = vpop.f32.mrf.mxu2 }
 0x142   :  { %v439_v17 = vpop.f32.mrf.mxu0  ;;  %v1017_v18 = vpop.f32.mrf.mxu1  ;;  %v1720_v27 = vadd.f32 %v1593_v16, %v1142_v21 }
 0x143   :  { %v2399_v19 = vsel %vm3671_vm3, %v2330_v15, %v1982_v54  ;;  %v1986_v20 = vpop.f32.mrf.mxu3  ;;  %v565_v22 = vadd.f32 %v3507_v39, %v439_v17 }
 0x144   :  { %2463 = vst [vmem:[%s4297_s6 + $0x10] sm:$0xff] %v2399_v19  ;;  %v1987_v23 = vadd.f32 %v3651_v13, %v1986_v20  ;;  %v1784_v40 = vmax.f32 %v1720_v27, 0.0 }
 0x145   :  { %v1143_v28 = vadd.f32 %v1017_v18, %v565_v22 }
 0x146   :  { %v3209_v24 = vpop.eup %3208  ;;  %v2140_v25 = vmul.f32 0.5, %v1987_v23 }
 0x147   :  { %v2267_v26 = vadd.f32 1.0, %v3209_v24 }
 0x148   :  { %3210 = vtanh.f32 %v2140_v25 }
 0x149   :  { %v2331_v29 = vmul.f32 0.5, %v2267_v26  ;;  %v1595_v30 = vpop.f32.mrf.mxu2 }
 0x14a   :  { %v1721_v33 = vadd.f32 %v1595_v30, %v1143_v28  ;;  %v442_v34 = vpop.f32.mrf.mxu0  ;;  %v1020_v35 = vpop.f32.mrf.mxu1 }
 0x14b   :  { %v2400_v37 = vsel %vm3671_vm3, %v2331_v29, %v1984_v8  ;;  %v1988_v38 = vpop.f32.mrf.mxu3  ;;  %v566_v48 = vadd.f32 %v3507_v39, %v442_v34  ;;  %v3115_v34 = vld [vmem:[%s4293_s0 + $0xb0] sm:$0xff] }
 0x14c   :  { %2464 = vst [vmem:[%s4297_s6 + $0x18] sm:$0xff] %v2400_v37  ;;  %v1785_v41 = vmax.f32 %v1721_v33, 0.0  ;;  %v1989_v42 = vadd.f32 %v3651_v13, %v1988_v38 }
 0x14d   :  { %2689 = vmatmul.msk.bf16.gmra.mxu0 %vm276_vm0, %v3113_v31  ;;  %2867 = vmatmul.msk.bf16.gmra.mxu1 %vm276_vm0, %v3148_v32  ;;  %v1144_v55 = vadd.f32 %v1020_v35, %v566_v48  ;;  %v3150_v35 = vld [vmem:[%s4293_s0 + $0xc0] sm:$0xff] }
 0x14e   :  { %v3211_v43 = vpop.eup %3210  ;;  %v2141_v45 = vmul.f32 0.5, %v1989_v42  ;;  %3045 = vmatmul.msk.bf16.gmra.mxu2 %vm276_vm0, %v3183_v36  ;;  %v1837_v46 = vpack.c.bf16 %v1785_v41, %v1784_v40  ;;  %v3185_v40 = vld [vmem:[%s4293_s0 + $0xd0] sm:$0xff] }
 0x14f   :  { %v2268_v47 = vadd.f32 1.0, %v3211_v43 }
 0x150   :  { %3212 = vtanh.f32 %v2141_v45  ;;  %3072 = vmatmul.msk.bf16.gmra.mxu3 %vm1870_vm1, %v1837_v46 }
 0x151   :  { %v2332_v49 = vmul.f32 0.5, %v2268_v47  ;;  %v1598_v50 = vpop.f32.mrf.mxu2 }
 0x152   :  { %v444_v51 = vpop.f32.mrf.mxu0  ;;  %v1022_v52 = vpop.f32.mrf.mxu1  ;;  %v1722_v61 = vadd.f32 %v1598_v50, %v1144_v55 }
 0x153   :  { %v2401_v53 = vsel %vm3671_vm3, %v2332_v49, %v1987_v23  ;;  %v1991_v54 = vpop.f32.mrf.mxu3  ;;  %v567_v56 = vadd.f32 %v3507_v39, %v444_v51 }
 0x154   :  { %2465 = vst [vmem:[%s4297_s6 + $0x20] sm:$0xff] %v2401_v53  ;;  %v1992_v57 = vadd.f32 %v3651_v13, %v1991_v54  ;;  %v1786_v9 = vmax.f32 %v1722_v61, 0.0 }
 0x155   :  { %v1145_v62 = vadd.f32 %v1022_v52, %v567_v56 }
 0x156   :  { %v3213_v58 = vpop.eup %3212  ;;  %v2142_v59 = vmul.f32 0.5, %v1992_v57 }
 0x157   :  { %v2269_v60 = vadd.f32 1.0, %v3213_v58 }
 0x158   :  { %3214 = vtanh.f32 %v2142_v59 }
 0x159   :  { %v2333_v63 = vmul.f32 0.5, %v2269_v60  ;;  %v1600_v0 = vpop.f32.mrf.mxu2 }
 0x15a   :  { %v1723_v3 = vadd.f32 %v1600_v0, %v1145_v62  ;;  %v447_v4 = vpop.f32.mrf.mxu0  ;;  %v1025_v5 = vpop.f32.mrf.mxu1 }
 0x15b   :  { %v2402_v7 = vsel %vm3671_vm3, %v2333_v63, %v1989_v42  ;;  %v1993_v8 = vpop.f32.mrf.mxu3  ;;  %v568_v17 = vadd.f32 %v3507_v39, %v447_v4  ;;  %v3116_v4 = vld [vmem:[%s4293_s0 + $0xb8] sm:$0xff] }
 0x15c   :  { %2466 = vst [vmem:[%s4297_s6 + $0x28] sm:$0xff] %v2402_v7  ;;  %v1787_v10 = vmax.f32 %v1723_v3, 0.0  ;;  %v1994_v11 = vadd.f32 %v3651_v13, %v1993_v8 }
 0x15d   :  { %2690 = vmatmul.msk.bf16.gmra.mxu0 %vm276_vm0, %v3114_v1  ;;  %2868 = vmatmul.msk.bf16.gmra.mxu1 %vm276_vm0, %v3149_v2  ;;  %v1146_v24 = vadd.f32 %v1025_v5, %v568_v17  ;;  %v3151_v5 = vld [vmem:[%s4293_s0 + $0xc8] sm:$0xff] }
 0x15e   :  { %v3215_v12 = vpop.eup %3214  ;;  %v1838_v14 = vpack.c.bf16 %v1787_v10, %v1786_v9  ;;  %v2143_v15 = vmul.f32 0.5, %v1994_v11  ;;  %3046 = vmatmul.msk.bf16.gmra.mxu2 %vm276_vm0, %v3184_v6  ;;  %v3186_v9 = vld [vmem:[%s4293_s0 + $0xd8] sm:$0xff] }
 0x15f   :  { %v2270_v16 = vadd.f32 1.0, %v3215_v12 }
 0x160   :  { %3216 = vtanh.f32 %v2143_v15  ;;  %3073 = vmatmul.msk.bf16.gmra.mxu3 %vm1870_vm1, %v1838_v14 }
 0x161   :  { %v2334_v18 = vmul.f32 0.5, %v2270_v16  ;;  %v1603_v19 = vpop.f32.mrf.mxu2 }
 0x162   :  { %v449_v20 = vpop.f32.mrf.mxu0  ;;  %v1027_v21 = vpop.f32.mrf.mxu1  ;;  %v1724_v30 = vadd.f32 %v1603_v19, %v1146_v24 }
 0x163   :  { %v2403_v22 = vsel %vm3671_vm3, %v2334_v18, %v1992_v57  ;;  %v1996_v23 = vpop.f32.mrf.mxu3  ;;  %v569_v25 = vadd.f32 %v3507_v39, %v449_v20 }
 0x164   :  { %2467 = vst [vmem:[%s4297_s6 + $0x30] sm:$0xff] %v2403_v22  ;;  %v1997_v26 = vadd.f32 %v3651_v13, %v1996_v23  ;;  %v1788_v43 = vmax.f32 %v1724_v30, 0.0 }
 0x165   :  { %v1147_v31 = vadd.f32 %v1027_v21, %v569_v25 }
 0x166   :  { %v3217_v27 = vpop.eup %3216  ;;  %v2144_v28 = vmul.f32 0.5, %v1997_v26 }
 0x167   :  { %v2271_v29 = vadd.f32 1.0, %v3217_v27 }
 0x168   :  { %3218 = vtanh.f32 %v2144_v28 }
 0x169   :  { %v2335_v32 = vmul.f32 0.5, %v2271_v29  ;;  %v1605_v33 = vpop.f32.mrf.mxu2 }
 0x16a   :  { %v1725_v36 = vadd.f32 %v1605_v33, %v1147_v31  ;;  %v452_v37 = vpop.f32.mrf.mxu0  ;;  %v1030_v38 = vpop.f32.mrf.mxu1 }
 0x16b   :  { %v2404_v41 = vsel %vm3671_vm3, %v2335_v32, %v1994_v11  ;;  %v1998_v42 = vpop.f32.mrf.mxu3  ;;  %v570_v51 = vadd.f32 %v3507_v39, %v452_v37  ;;  %v3117_v37 = vld [vmem:[%s4293_s0 + $0xc0] sm:$0xff] }
 0x16c   :  { %2468 = vst [vmem:[%s4297_s6 + $0x38] sm:$0xff] %v2404_v41  ;;  %v1789_v45 = vmax.f32 %v1725_v36, 0.0  ;;  %v1999_v46 = vadd.f32 %v3651_v13, %v1998_v42 }
 0x16d   :  { %2691 = vmatmul.msk.bf16.gmra.mxu0 %vm276_vm0, %v3115_v34  ;;  %2869 = vmatmul.msk.bf16.gmra.mxu1 %vm276_vm0, %v3150_v35  ;;  %v1148_v58 = vadd.f32 %v1030_v38, %v570_v51  ;;  %v3152_v38 = vld [vmem:[%s4293_s0 + $0xd0] sm:$0xff] }
 0x16e   :  { %v3219_v47 = vpop.eup %3218  ;;  %v1839_v48 = vpack.c.bf16 %v1789_v45, %v1788_v43  ;;  %v2145_v49 = vmul.f32 0.5, %v1999_v46  ;;  %3047 = vmatmul.msk.bf16.gmra.mxu2 %vm276_vm0, %v3185_v40  ;;  %v3187_v43 = vld [vmem:[%s4293_s0 + $0xe0] sm:$0xff] }
 0x16f   :  { %v2272_v50 = vadd.f32 1.0, %v3219_v47 }
 0x170   :  { %3220 = vtanh.f32 %v2145_v49  ;;  %3074 = vmatmul.msk.bf16.gmra.mxu3 %vm1870_vm1, %v1839_v48 }
 0x171   :  { %v2336_v52 = vmul.f32 0.5, %v2272_v50  ;;  %v1608_v53 = vpop.f32.mrf.mxu2 }
 0x172   :  { %v454_v54 = vpop.f32.mrf.mxu0  ;;  %v1032_v55 = vpop.f32.mrf.mxu1  ;;  %v1726_v0 = vadd.f32 %v1608_v53, %v1148_v58 }
 0x173   :  { %v2405_v56 = vsel %vm3671_vm3, %v2336_v52, %v1997_v26  ;;  %v2001_v57 = vpop.f32.mrf.mxu3  ;;  %v571_v59 = vadd.f32 %v3507_v39, %v454_v54 }
 0x174   :  { %2469 = vst [vmem:[%s4297_s6 + $0x40] sm:$0xff] %v2405_v56  ;;  %v2002_v60 = vadd.f32 %v3651_v13, %v2001_v57  ;;  %v1790_v12 = vmax.f32 %v1726_v0, 0.0 }
 0x175   :  { %v1149_v1 = vadd.f32 %v1032_v55, %v571_v59 }
 0x176   :  { %v3221_v61 = vpop.eup %3220  ;;  %v2146_v62 = vmul.f32 0.5, %v2002_v60 }
 0x177   :  { %v2273_v63 = vadd.f32 1.0, %v3221_v61 }
 0x178   :  { %3222 = vtanh.f32 %v2146_v62 }
 0x179   :  { %v2337_v2 = vmul.f32 0.5, %v2273_v63  ;;  %v1610_v3 = vpop.f32.mrf.mxu2 }
 0x17a   :  { %v1727_v6 = vadd.f32 %v1610_v3, %v1149_v1  ;;  %v457_v7 = vpop.f32.mrf.mxu0  ;;  %v1035_v8 = vpop.f32.mrf.mxu1 }
 0x17b   :  { %v2406_v10 = vsel %vm3671_vm3, %v2337_v2, %v1999_v46  ;;  %v2003_v11 = vpop.f32.mrf.mxu3  ;;  %v572_v20 = vadd.f32 %v3507_v39, %v457_v7  ;;  %v3118_v7 = vld [vmem:[%s4293_s0 + $0xc8] sm:$0xff] }
 0x17c   :  { %2470 = vst [vmem:[%s4297_s6 + $0x48] sm:$0xff] %v2406_v10  ;;  %v1791_v14 = vmax.f32 %v1727_v6, 0.0  ;;  %v2004_v15 = vadd.f32 %v3651_v13, %v2003_v11  ;;  %v3188_v11 = vld [vmem:[%s4293_s0 + $0xe8] sm:$0xff] }
 0x17d   :  { %2692 = vmatmul.msk.bf16.gmra.mxu0 %vm276_vm0, %v3116_v4  ;;  %2870 = vmatmul.msk.bf16.gmra.mxu1 %vm276_vm0, %v3151_v5  ;;  %v1150_v27 = vadd.f32 %v1035_v8, %v572_v20  ;;  %v3153_v8 = vld [vmem:[%s4293_s0 + $0xd8] sm:$0xff] }
 0x17e   :  { %v3223_v16 = vpop.eup %3222  ;;  %v1840_v17 = vpack.c.bf16 %v1791_v14, %v1790_v12  ;;  %v2147_v18 = vmul.f32 0.5, %v2004_v15  ;;  %3048 = vmatmul.msk.bf16.gmra.mxu2 %vm276_vm0, %v3186_v9 }
 0x17f   :  { %v2274_v19 = vadd.f32 1.0, %v3223_v16 }
 0x180   :  { %3224 = vtanh.f32 %v2147_v18  ;;  %3075 = vmatmul.msk.bf16.gmra.mxu3 %vm1870_vm1, %v1840_v17 }
 0x181   :  { %v2338_v21 = vmul.f32 0.5, %v2274_v19  ;;  %v1613_v22 = vpop.f32.mrf.mxu2 }
 0x182   :  { %v459_v23 = vpop.f32.mrf.mxu0  ;;  %v1037_v24 = vpop.f32.mrf.mxu1  ;;  %v1728_v33 = vadd.f32 %v1613_v22, %v1150_v27  ;;  %v3867_v22 = vld [vmem:[%s4292_s2] ss:$0 sm:$0xff] }
 0x183   :  { %v2407_v25 = vsel %vm3671_vm3, %v2338_v21, %v2002_v60  ;;  %v2006_v26 = vpop.f32.mrf.mxu3  ;;  %v573_v28 = vadd.f32 %v3507_v39, %v459_v23 }
 0x184   :  { %2471 = vst [vmem:[%s4297_s6 + $0x50] sm:$0xff] %v2407_v25  ;;  %v2007_v29 = vadd.f32 %v3651_v13, %v2006_v26  ;;  %v1792_v47 = vmax.f32 %v1728_v33, 0.0 }
 0x185   :  { %v1151_v34 = vadd.f32 %v1037_v24, %v573_v28 }
 0x186   :  { %v3225_v30 = vpop.eup %3224  ;;  %v2148_v31 = vmul.f32 0.5, %v2007_v29 }
 0x187   :  { %v2275_v32 = vadd.f32 1.0, %v3225_v30 }
 0x188   :  { %3226 = vtanh.f32 %v2148_v31 }
 0x189   :  { %v2339_v35 = vmul.f32 0.5, %v2275_v32  ;;  %v1615_v36 = vpop.f32.mrf.mxu2 }
 0x18a   :  { %v1729_v40 = vadd.f32 %v1615_v36, %v1151_v34  ;;  %v462_v41 = vpop.f32.mrf.mxu0  ;;  %v1040_v42 = vpop.f32.mrf.mxu1 }
 0x18b   :  { %v2408_v45 = vsel %vm3671_vm3, %v2339_v35, %v2004_v15  ;;  %v2008_v46 = vpop.f32.mrf.mxu3  ;;  %v574_v54 = vadd.f32 %v3507_v39, %v462_v41  ;;  %v3119_v41 = vld [vmem:[%s4293_s0 + $0xd0] sm:$0xff] }
 0x18c   :  { %2472 = vst [vmem:[%s4297_s6 + $0x58] sm:$0xff] %v2408_v45  ;;  %v1793_v48 = vmax.f32 %v1729_v40, 0.0  ;;  %v2009_v49 = vadd.f32 %v3651_v13, %v2008_v46 }
 0x18d   :  { %2693 = vmatmul.msk.bf16.gmra.mxu0 %vm276_vm0, %v3117_v37  ;;  %2871 = vmatmul.msk.bf16.gmra.mxu1 %vm276_vm0, %v3152_v38  ;;  %v1152_v61 = vadd.f32 %v1040_v42, %v574_v54  ;;  %v3154_v42 = vld [vmem:[%s4293_s0 + $0xe0] sm:$0xff] }
 0x18e   :  { %v3227_v50 = vpop.eup %3226  ;;  %v1841_v51 = vpack.c.bf16 %v1793_v48, %v1792_v47  ;;  %v2149_v52 = vmul.f32 0.5, %v2009_v49  ;;  %3049 = vmatmul.msk.bf16.gmra.mxu2 %vm276_vm0, %v3187_v43  ;;  %v3189_v47 = vld [vmem:[%s4293_s0 + $0xf0] sm:$0xff] }
 0x18f   :  { %v2276_v53 = vadd.f32 1.0, %v3227_v50 }
 0x190   :  { %3228 = vtanh.f32 %v2149_v52  ;;  %3076 = vmatmul.msk.bf16.gmra.mxu3 %vm1870_vm1, %v1841_v51 }
 0x191   :  { %v2340_v55 = vmul.f32 0.5, %v2276_v53  ;;  %v1618_v56 = vpop.f32.mrf.mxu2 }
 0x192   :  { %v464_v57 = vpop.f32.mrf.mxu0  ;;  %v1042_v58 = vpop.f32.mrf.mxu1  ;;  %v1730_v3 = vadd.f32 %v1618_v56, %v1152_v61 }
 0x193   :  { %v2409_v59 = vsel %vm3671_vm3, %v2340_v55, %v2007_v29  ;;  %v2011_v60 = vpop.f32.mrf.mxu3  ;;  %v575_v62 = vadd.f32 %v3507_v39, %v464_v57 }
 0x194   :  { %2473 = vst [vmem:[%s4297_s6 + $0x60] sm:$0xff] %v2409_v59  ;;  %v2012_v63 = vadd.f32 %v3651_v13, %v2011_v60  ;;  %v1794_v15 = vmax.f32 %v1730_v3, 0.0 }
 0x195   :  { %v1153_v4 = vadd.f32 %v1042_v58, %v575_v62 }
 0x196   :  { %v3229_v0 = vpop.eup %3228  ;;  %v2150_v1 = vmul.f32 0.5, %v2012_v63 }
 0x197   :  { %v2277_v2 = vadd.f32 1.0, %v3229_v0 }
 0x198   :  { %3230 = vtanh.f32 %v2150_v1 }
 0x199   :  { %v2341_v5 = vmul.f32 0.5, %v2277_v2  ;;  %v1620_v6 = vpop.f32.mrf.mxu2 }
 0x19a   :  { %v1731_v9 = vadd.f32 %v1620_v6, %v1153_v4  ;;  %v467_v39 = vpop.f32.mrf.mxu0  ;;  %v1045_v10 = vpop.f32.mrf.mxu1 }
 0x19b   :  { %v2410_v12 = vsel %vm3671_vm3, %v2341_v5, %v2009_v49  ;;  %v2013_v14 = vpop.f32.mrf.mxu3  ;;  %v576_v23 = vadd.f32 %v3867_v22, %v467_v39  ;;  %v3120_v39 = vld [vmem:[%s4293_s0 + $0xd8] sm:$0xff] }
 0x19c   :  { %2474 = vst [vmem:[%s4297_s6 + $0x68] sm:$0xff] %v2410_v12  ;;  %v1795_v16 = vmax.f32 %v1731_v9, 0.0  ;;  %v2014_v17 = vadd.f32 %v3651_v13, %v2013_v14 }
 0x19d   :  { %2694 = vmatmul.msk.bf16.gmra.mxu0 %vm276_vm0, %v3118_v7  ;;  %2872 = vmatmul.msk.bf16.gmra.mxu1 %vm276_vm0, %v3153_v8  ;;  %v1154_v30 = vadd.f32 %v1045_v10, %v576_v23  ;;  %v3155_v10 = vld [vmem:[%s4293_s0 + $0xe8] sm:$0xff] }
 0x19e   :  { %v3231_v18 = vpop.eup %3230  ;;  %v1842_v19 = vpack.c.bf16 %v1795_v16, %v1794_v15  ;;  %v2151_v20 = vmul.f32 0.5, %v2014_v17  ;;  %3050 = vmatmul.msk.bf16.gmra.mxu2 %vm276_vm0, %v3188_v11  ;;  %v3190_v15 = vld [vmem:[%s4293_s0 + $0xf8] sm:$0xff] }
 0x19f   :  { %v2278_v21 = vadd.f32 1.0, %v3231_v18 }
 0x1a0   :  { %3232 = vtanh.f32 %v2151_v20  ;;  %3077 = vmatmul.msk.bf16.gmra.mxu3 %vm1870_vm1, %v1842_v19 }
 0x1a1   :  { %v2342_v24 = vmul.f32 0.5, %v2278_v21  ;;  %v1623_v25 = vpop.f32.mrf.mxu2 }
 0x1a2   :  { %v469_v26 = vpop.f32.mrf.mxu0  ;;  %v1047_v27 = vpop.f32.mrf.mxu1  ;;  %v1732_v36 = vadd.f32 %v1623_v25, %v1154_v30 }
 0x1a3   :  { %v2411_v28 = vsel %vm3671_vm3, %v2342_v24, %v2012_v63  ;;  %v2016_v29 = vpop.f32.mrf.mxu3  ;;  %v577_v31 = vadd.f32 %v3867_v22, %v469_v26 }
 0x1a4   :  { %2475 = vst [vmem:[%s4297_s6 + $0x70] sm:$0xff] %v2411_v28  ;;  %v2017_v32 = vadd.f32 %v3651_v13, %v2016_v29  ;;  %v1796_v50 = vmax.f32 %v1732_v36, 0.0 }
 0x1a5   :  { %v1155_v37 = vadd.f32 %v1047_v27, %v577_v31 }
 0x1a6   :  { %v3233_v33 = vpop.eup %3232  ;;  %v2152_v34 = vmul.f32 0.5, %v2017_v32 }
 0x1a7   :  { %v2279_v35 = vadd.f32 1.0, %v3233_v33 }
 0x1a8   :  { %3234 = vtanh.f32 %v2152_v34 }
 0x1a9   :  { %v2343_v38 = vmul.f32 0.5, %v2279_v35  ;;  %v1625_v40 = vpop.f32.mrf.mxu2 }
 0x1aa   :  { %v1733_v43 = vadd.f32 %v1625_v40, %v1155_v37  ;;  %v472_v45 = vpop.f32.mrf.mxu0  ;;  %v1050_v46 = vpop.f32.mrf.mxu1 }
 0x1ab   :  { %v2412_v48 = vsel %vm3671_vm3, %v2343_v38, %v2014_v17  ;;  %v2018_v49 = vpop.f32.mrf.mxu3  ;;  %v578_v57 = vadd.f32 %v3867_v22, %v472_v45  ;;  %v3121_v45 = vld [vmem:[%s4293_s0 + $0xe0] sm:$0xff] }
 0x1ac   :  { %2476 = vst [vmem:[%s4297_s6 + $0x78] sm:$0xff] %v2412_v48  ;;  %v1797_v51 = vmax.f32 %v1733_v43, 0.0  ;;  %v2019_v52 = vadd.f32 %v3651_v13, %v2018_v49 }
 0x1ad   :  { %2695 = vmatmul.msk.bf16.gmra.mxu0 %vm276_vm0, %v3119_v41  ;;  %2873 = vmatmul.msk.bf16.gmra.mxu1 %vm276_vm0, %v3154_v42  ;;  %v1156_v0 = vadd.f32 %v1050_v46, %v578_v57  ;;  %v3156_v46 = vld [vmem:[%s4293_s0 + $0xf0] sm:$0xff] }
 0x1ae   :  { %v3235_v53 = vpop.eup %3234  ;;  %v1843_v54 = vpack.c.bf16 %v1797_v51, %v1796_v50  ;;  %v2153_v55 = vmul.f32 0.5, %v2019_v52  ;;  %3051 = vmatmul.msk.bf16.gmra.mxu2 %vm276_vm0, %v3189_v47  ;;  %v3191_v50 = vld [vmem:[%s4293_s0 + $0x100] sm:$0xff] }
 0x1af   :  { %v2280_v56 = vadd.f32 1.0, %v3235_v53 }
 0x1b0   :  { %3236 = vtanh.f32 %v2153_v55  ;;  %3078 = vmatmul.msk.bf16.gmra.mxu3 %vm1870_vm1, %v1843_v54 }
 0x1b1   :  { %v2344_v58 = vmul.f32 0.5, %v2280_v56  ;;  %v1628_v59 = vpop.f32.mrf.mxu2 }
 0x1b2   :  { %v474_v60 = vpop.f32.mrf.mxu0  ;;  %v1052_v61 = vpop.f32.mrf.mxu1  ;;  %v1734_v6 = vadd.f32 %v1628_v59, %v1156_v0 }
 0x1b3   :  { %v2413_v62 = vsel %vm3671_vm3, %v2344_v58, %v2017_v32  ;;  %v2021_v63 = vpop.f32.mrf.mxu3  ;;  %v579_v1 = vadd.f32 %v3867_v22, %v474_v60 }
 0x1b4   :  { %2477 = vst [vmem:[%s4297_s6 + $0x80] sm:$0xff] %v2413_v62  ;;  %v2022_v2 = vadd.f32 %v3651_v13, %v2021_v63  ;;  %v1798_v18 = vmax.f32 %v1734_v6, 0.0 }
 0x1b5   :  { %v1157_v7 = vadd.f32 %v1052_v61, %v579_v1 }
 0x1b6   :  { %v3237_v3 = vpop.eup %3236  ;;  %v2154_v4 = vmul.f32 0.5, %v2022_v2 }
 0x1b7   :  { %v2281_v5 = vadd.f32 1.0, %v3237_v3 }
 0x1b8   :  { %3238 = vtanh.f32 %v2154_v4 }
 0x1b9   :  { %v2345_v8 = vmul.f32 0.5, %v2281_v5  ;;  %v1630_v9 = vpop.f32.mrf.mxu2 }
 0x1ba   :  { %v1735_v11 = vadd.f32 %v1630_v9, %v1157_v7  ;;  %v477_v12 = vpop.f32.mrf.mxu0  ;;  %v1055_v14 = vpop.f32.mrf.mxu1 }
 0x1bb   :  { %v2414_v16 = vsel %vm3671_vm3, %v2345_v8, %v2019_v52  ;;  %v2023_v17 = vpop.f32.mrf.mxu3  ;;  %v580_v26 = vadd.f32 %v3867_v22, %v477_v12  ;;  %v3122_v12 = vld [vmem:[%s4293_s0 + $0xe8] sm:$0xff] }
 0x1bc   :  { %2478 = vst [vmem:[%s4297_s6 + $0x88] sm:$0xff] %v2414_v16  ;;  %v1799_v19 = vmax.f32 %v1735_v11, 0.0  ;;  %v2024_v20 = vadd.f32 %v3651_v13, %v2023_v17 }
 0x1bd   :  { %2696 = vmatmul.msk.bf16.gmra.mxu0 %vm276_vm0, %v3120_v39  ;;  %2874 = vmatmul.msk.bf16.gmra.mxu1 %vm276_vm0, %v3155_v10  ;;  %v1158_v33 = vadd.f32 %v1055_v14, %v580_v26  ;;  %v3157_v14 = vld [vmem:[%s4293_s0 + $0xf8] sm:$0xff] }
 0x1be   :  { %v3239_v21 = vpop.eup %3238  ;;  %v1844_v23 = vpack.c.bf16 %v1799_v19, %v1798_v18  ;;  %v2155_v24 = vmul.f32 0.5, %v2024_v20  ;;  %3052 = vmatmul.msk.bf16.gmra.mxu2 %vm276_vm0, %v3190_v15  ;;  %v3192_v18 = vld [vmem:[%s4293_s0 + $0x108] sm:$0xff] }
 0x1bf   :  { %v2282_v25 = vadd.f32 1.0, %v3239_v21 }
 0x1c0   :  { %3240 = vtanh.f32 %v2155_v24  ;;  %3079 = vmatmul.msk.bf16.gmra.mxu3 %vm1870_vm1, %v1844_v23 }
 0x1c1   :  { %v2346_v27 = vmul.f32 0.5, %v2282_v25  ;;  %v1633_v28 = vpop.f32.mrf.mxu2 }
 0x1c2   :  { %v479_v29 = vpop.f32.mrf.mxu0  ;;  %v1057_v30 = vpop.f32.mrf.mxu1  ;;  %v1736_v40 = vadd.f32 %v1633_v28, %v1158_v33 }
 0x1c3   :  { %v2415_v31 = vsel %vm3671_vm3, %v2346_v27, %v2022_v2  ;;  %v2026_v32 = vpop.f32.mrf.mxu3  ;;  %v581_v34 = vadd.f32 %v3867_v22, %v479_v29 }
 0x1c4   :  { %2479 = vst [vmem:[%s4297_s6 + $0x90] sm:$0xff] %v2415_v31  ;;  %v2027_v35 = vadd.f32 %v3651_v13, %v2026_v32  ;;  %v1800_v53 = vmax.f32 %v1736_v40, 0.0 }
 0x1c5   :  { %v1159_v41 = vadd.f32 %v1057_v30, %v581_v34 }
 0x1c6   :  { %v3241_v36 = vpop.eup %3240  ;;  %v2156_v37 = vmul.f32 0.5, %v2027_v35 }
 0x1c7   :  { %v2283_v38 = vadd.f32 1.0, %v3241_v36 }
 0x1c8   :  { %3242 = vtanh.f32 %v2156_v37 }
 0x1c9   :  { %v2347_v42 = vmul.f32 0.5, %v2283_v38  ;;  %v1635_v43 = vpop.f32.mrf.mxu2 }
 0x1ca   :  { %v1737_v47 = vadd.f32 %v1635_v43, %v1159_v41  ;;  %v482_v48 = vpop.f32.mrf.mxu0  ;;  %v1060_v49 = vpop.f32.mrf.mxu1 }
 0x1cb   :  { %v2416_v51 = vsel %vm3671_vm3, %v2347_v42, %v2024_v20  ;;  %v2028_v52 = vpop.f32.mrf.mxu3  ;;  %v582_v60 = vadd.f32 %v3867_v22, %v482_v48  ;;  %v3123_v48 = vld [vmem:[%s4293_s0 + $0xf0] sm:$0xff] }
 0x1cc   :  { %2480 = vst [vmem:[%s4297_s6 + $0x98] sm:$0xff] %v2416_v51  ;;  %v1801_v54 = vmax.f32 %v1737_v47, 0.0  ;;  %v2029_v55 = vadd.f32 %v3651_v13, %v2028_v52 }
 0x1cd   :  { %2697 = vmatmul.msk.bf16.gmra.mxu0 %vm276_vm0, %v3121_v45  ;;  %2875 = vmatmul.msk.bf16.gmra.mxu1 %vm276_vm0, %v3156_v46  ;;  %v1160_v3 = vadd.f32 %v1060_v49, %v582_v60  ;;  %v3158_v49 = vld [vmem:[%s4293_s0 + $0x100] sm:$0xff] }
 0x1ce   :  { %v3243_v56 = vpop.eup %3242  ;;  %v1845_v57 = vpack.c.bf16 %v1801_v54, %v1800_v53  ;;  %v2157_v58 = vmul.f32 0.5, %v2029_v55  ;;  %3053 = vmatmul.msk.bf16.gmra.mxu2 %vm276_vm0, %v3191_v50  ;;  %v3193_v53 = vld [vmem:[%s4293_s0 + $0x110] sm:$0xff] }
 0x1cf   :  { %v2284_v59 = vadd.f32 1.0, %v3243_v56 }
 0x1d0   :  { %3244 = vtanh.f32 %v2157_v58  ;;  %3080 = vmatmul.msk.bf16.gmra.mxu3 %vm1870_vm1, %v1845_v57 }
 0x1d1   :  { %v2348_v61 = vmul.f32 0.5, %v2284_v59  ;;  %v1638_v62 = vpop.f32.mrf.mxu2 }
 0x1d2   :  { %v484_v63 = vpop.f32.mrf.mxu0  ;;  %v1062_v0 = vpop.f32.mrf.mxu1  ;;  %v1738_v9 = vadd.f32 %v1638_v62, %v1160_v3 }
 0x1d3   :  { %v2417_v1 = vsel %vm3671_vm3, %v2348_v61, %v2027_v35  ;;  %v2031_v2 = vpop.f32.mrf.mxu3  ;;  %v583_v4 = vadd.f32 %v3867_v22, %v484_v63 }
 0x1d4   :  { %2481 = vst [vmem:[%s4297_s6 + $0xa0] sm:$0xff] %v2417_v1  ;;  %v2032_v5 = vadd.f32 %v3651_v13, %v2031_v2  ;;  %v1802_v21 = vmax.f32 %v1738_v9, 0.0 }
 0x1d5   :  { %v1161_v39 = vadd.f32 %v1062_v0, %v583_v4 }
 0x1d6   :  { %v3245_v6 = vpop.eup %3244  ;;  %v2158_v7 = vmul.f32 0.5, %v2032_v5 }
 0x1d7   :  { %v2285_v8 = vadd.f32 1.0, %v3245_v6 }
 0x1d8   :  { %3246 = vtanh.f32 %v2158_v7  ;;  %v4015_v7 = vld [vmem:[%s4295_s4] ss:$0 sm:$0xff] }
 0x1d9   :  { %v2349_v10 = vmul.f32 0.5, %v2285_v8  ;;  %v1640_v11 = vpop.f32.mrf.mxu2 }
 0x1da   :  { %v1739_v15 = vadd.f32 %v1640_v11, %v1161_v39  ;;  %v487_v16 = vpop.f32.mrf.mxu0  ;;  %v1065_v17 = vpop.f32.mrf.mxu1 }
 0x1db   :  { %v2418_v19 = vsel %vm3671_vm3, %v2349_v10, %v2029_v55  ;;  %v2033_v20 = vpop.f32.mrf.mxu3  ;;  %v584_v29 = vadd.f32 %v3867_v22, %v487_v16  ;;  %v3124_v16 = vld [vmem:[%s4293_s0 + $0xf8] sm:$0xff] }
 0x1dc   :  { %2482 = vst [vmem:[%s4297_s6 + $0xa8] sm:$0xff] %v2418_v19  ;;  %v1803_v23 = vmax.f32 %v1739_v15, 0.0  ;;  %v2034_v24 = vadd.f32 %v3651_v13, %v2033_v20 }
 0x1dd   :  { %2698 = vmatmul.msk.bf16.gmra.mxu0 %vm276_vm0, %v3122_v12  ;;  %2876 = vmatmul.msk.bf16.gmra.mxu1 %vm276_vm0, %v3157_v14  ;;  %v1162_v36 = vadd.f32 %v1065_v17, %v584_v29  ;;  %v3159_v17 = vld [vmem:[%s4293_s0 + $0x108] sm:$0xff] }
 0x1de   :  { %v3247_v25 = vpop.eup %3246  ;;  %v1846_v26 = vpack.c.bf16 %v1803_v23, %v1802_v21  ;;  %v2159_v27 = vmul.f32 0.5, %v2034_v24  ;;  %3054 = vmatmul.msk.bf16.gmra.mxu2 %vm276_vm0, %v3192_v18  ;;  %v3194_v21 = vld [vmem:[%s4293_s0 + $0x118] sm:$0xff] }
 0x1df   :  { %v2286_v28 = vadd.f32 1.0, %v3247_v25 }
 0x1e0   :  { %3248 = vtanh.f32 %v2159_v27  ;;  %3081 = vmatmul.msk.bf16.gmra.mxu3 %vm1870_vm1, %v1846_v26 }
 0x1e1   :  { %v2350_v30 = vmul.f32 0.5, %v2286_v28  ;;  %v1643_v31 = vpop.f32.mrf.mxu2 }
 0x1e2   :  { %v489_v32 = vpop.f32.mrf.mxu0  ;;  %v1067_v33 = vpop.f32.mrf.mxu1  ;;  %v1740_v43 = vadd.f32 %v1643_v31, %v1162_v36 }
 0x1e3   :  { %v2419_v34 = vsel %vm3671_vm3, %v2350_v30, %v2032_v5  ;;  %v2036_v35 = vpop.f32.mrf.mxu3  ;;  %v585_v37 = vadd.f32 %v3867_v22, %v489_v32 }
 0x1e4   :  { %2483 = vst [vmem:[%s4297_s6 + $0xb0] sm:$0xff] %v2419_v34  ;;  %v2037_v38 = vadd.f32 %v3651_v13, %v2036_v35  ;;  %v1804_v56 = vmax.f32 %v1740_v43, 0.0 }
 0x1e5   :  { %v1163_v45 = vadd.f32 %v1067_v33, %v585_v37 }
 0x1e6   :  { %v3249_v40 = vpop.eup %3248  ;;  %v2160_v41 = vmul.f32 0.5, %v2037_v38 }
 0x1e7   :  { %v2287_v42 = vadd.f32 1.0, %v3249_v40 }
 0x1e8   :  { %3250 = vtanh.f32 %v2160_v41 }
 0x1e9   :  { %v2351_v46 = vmul.f32 0.5, %v2287_v42  ;;  %v1645_v47 = vpop.f32.mrf.mxu2 }
 0x1ea   :  { %v1741_v50 = vadd.f32 %v1645_v47, %v1163_v45  ;;  %v492_v51 = vpop.f32.mrf.mxu0  ;;  %v1070_v52 = vpop.f32.mrf.mxu1 }
 0x1eb   :  { %v2420_v54 = vsel %vm3671_vm3, %v2351_v46, %v2034_v24  ;;  %v2038_v55 = vpop.f32.mrf.mxu3  ;;  %v586_v63 = vadd.f32 %v3867_v22, %v492_v51 }
 0x1ec   :  { %2484 = vst [vmem:[%s4297_s6 + $0xb8] sm:$0xff] %v2420_v54  ;;  %v1805_v57 = vmax.f32 %v1741_v50, 0.0  ;;  %v2039_v58 = vadd.f32 %v3651_v13, %v2038_v55 }
 0x1ed   :  { %2699 = vmatmul.msk.bf16.gmra.mxu0 %vm276_vm0, %v3123_v48  ;;  %2877 = vmatmul.msk.bf16.gmra.mxu1 %vm276_vm0, %v3158_v49  ;;  %v1164_v5 = vadd.f32 %v1070_v52, %v586_v63 }
 0x1ee   :  { %v3251_v59 = vpop.eup %3250  ;;  %v1847_v60 = vpack.c.bf16 %v1805_v57, %v1804_v56  ;;  %v2161_v61 = vmul.f32 0.5, %v2039_v58  ;;  %3055 = vmatmul.msk.bf16.gmra.mxu2 %vm276_vm0, %v3193_v53 }
 0x1ef   :  { %v2288_v62 = vadd.f32 1.0, %v3251_v59 }
 0x1f0   :  { %3252 = vtanh.f32 %v2161_v61  ;;  %3082 = vmatmul.msk.bf16.gmra.mxu3 %vm1870_vm1, %v1847_v60 }
 0x1f1   :  { %v2352_v0 = vmul.f32 0.5, %v2288_v62  ;;  %v1648_v1 = vpop.f32.mrf.mxu2 }
 0x1f2   :  { %v494_v2 = vpop.f32.mrf.mxu0  ;;  %v1072_v3 = vpop.f32.mrf.mxu1  ;;  %v1742_v11 = vadd.f32 %v1648_v1, %v1164_v5 }
 0x1f3   :  { %v2421_v13 = vsel %vm3671_vm3, %v2352_v0, %v2037_v38  ;;  %v2041_v4 = vpop.f32.mrf.mxu3  ;;  %v587_v6 = vadd.f32 %v3867_v22, %v494_v2 }
 0x1f4   :  { %2485 = vst [vmem:[%s4297_s6 + $0xc0] sm:$0xff] %v2421_v13  ;;  %v2042_v8 = vadd.f32 %v4015_v7, %v2041_v4  ;;  %v1806_v25 = vmax.f32 %v1742_v11, 0.0 }
 0x1f5   :  { %v1165_v12 = vadd.f32 %v1072_v3, %v587_v6 }
 0x1f6   :  { %v3253_v9 = vpop.eup %3252  ;;  %v2162_v39 = vmul.f32 0.5, %v2042_v8 }
 0x1f7   :  { %v2289_v10 = vadd.f32 1.0, %v3253_v9 }
 0x1f8   :  { %3254 = vtanh.f32 %v2162_v39 }
 0x1f9   :  { %v2353_v14 = vmul.f32 0.5, %v2289_v10  ;;  %v1650_v15 = vpop.f32.mrf.mxu2 }
 0x1fa   :  { %v1743_v18 = vadd.f32 %v1650_v15, %v1165_v12  ;;  %v497_v19 = vpop.f32.mrf.mxu0  ;;  %v1075_v20 = vpop.f32.mrf.mxu1 }
 0x1fb   :  { %v2422_v23 = vsel %vm3671_vm3, %v2353_v14, %v2039_v58  ;;  %v2043_v24 = vpop.f32.mrf.mxu3  ;;  %v588_v32 = vadd.f32 %v3867_v22, %v497_v19 }
 0x1fc   :  { %2486 = vst [vmem:[%s4297_s6 + $0xc8] sm:$0xff] %v2422_v23  ;;  %v1807_v26 = vmax.f32 %v1743_v18, 0.0  ;;  %v2044_v27 = vadd.f32 %v4015_v7, %v2043_v24 }
 0x1fd   :  { %2700 = vmatmul.msk.bf16.gmra.mxu0 %vm276_vm0, %v3124_v16  ;;  %2878 = vmatmul.msk.bf16.gmra.mxu1 %vm276_vm0, %v3159_v17  ;;  %v1166_v40 = vadd.f32 %v1075_v20, %v588_v32 }
 0x1fe   :  { %v3255_v28 = vpop.eup %3254  ;;  %v1848_v29 = vpack.c.bf16 %v1807_v26, %v1806_v25  ;;  %v2163_v30 = vmul.f32 0.5, %v2044_v27  ;;  %3056 = vmatmul.msk.bf16.gmra.mxu2 %vm276_vm0, %v3194_v21 }
 0x1ff   :  { %v2290_v31 = vadd.f32 1.0, %v3255_v28 }
 0x200   :  { %3256 = vtanh.f32 %v2163_v30  ;;  %3083 = vmatmul.msk.bf16.gmra.mxu3 %vm1870_vm1, %v1848_v29 }
 0x201   :  { %v2354_v33 = vmul.f32 0.5, %v2290_v31  ;;  %v1653_v34 = vpop.f32.mrf.mxu2 }
 0x202   :  { %v499_v35 = vpop.f32.mrf.mxu0  ;;  %v1077_v36 = vpop.f32.mrf.mxu1  ;;  %v1744_v47 = vadd.f32 %v1653_v34, %v1166_v40 }
 0x203   :  { %v2423_v37 = vsel %vm3671_vm3, %v2354_v33, %v2042_v8  ;;  %v2046_v38 = vpop.f32.mrf.mxu3  ;;  %v589_v41 = vadd.f32 %v3867_v22, %v499_v35 }
 0x204   :  { %2487 = vst [vmem:[%s4297_s6 + $0xd0] sm:$0xff] %v2423_v37  ;;  %v2047_v42 = vadd.f32 %v4015_v7, %v2046_v38  ;;  %v1808_v56 = vmax.f32 %v1744_v47, 0.0 }
 0x205   :  { %v1167_v48 = vadd.f32 %v1077_v36, %v589_v41 }
 0x206   :  { %v3257_v43 = vpop.eup %3256  ;;  %v2164_v45 = vmul.f32 0.5, %v2047_v42 }
 0x207   :  { %v2291_v46 = vadd.f32 1.0, %v3257_v43 }
 0x208   :  { %3258 = vtanh.f32 %v2164_v45 }
 0x209   :  { %v2355_v49 = vmul.f32 0.5, %v2291_v46  ;;  %v1655_v50 = vpop.f32.mrf.mxu2 }
 0x20a   :  { %v1745_v51 = vadd.f32 %v1655_v50, %v1167_v48  ;;  %v502_v52 = vpop.f32.mrf.mxu0  ;;  %v1080_v53 = vpop.f32.mrf.mxu1 }
 0x20b   :  { %v2424_v54 = vsel %vm3671_vm3, %v2355_v49, %v2044_v27  ;;  %v2048_v55 = vpop.f32.mrf.mxu3  ;;  %v590_v63 = vadd.f32 %v3867_v22, %v502_v52 }
 0x20c   :  { %2488 = vst [vmem:[%s4297_s6 + $0xd8] sm:$0xff] %v2424_v54  ;;  %v1809_v57 = vmax.f32 %v1745_v51, 0.0  ;;  %v2049_v58 = vadd.f32 %v4015_v7, %v2048_v55 }
 0x20d   :  { %v1168_v5 = vadd.f32 %v1080_v53, %v590_v63 }
 0x20e   :  { %v3259_v59 = vpop.eup %3258  ;;  %v1849_v60 = vpack.c.bf16 %v1809_v57, %v1808_v56  ;;  %v2165_v61 = vmul.f32 0.5, %v2049_v58 }
 0x20f   :  { %v2292_v62 = vadd.f32 1.0, %v3259_v59 }
 0x210   :  { %3260 = vtanh.f32 %v2165_v61  ;;  %3084 = vmatmul.msk.bf16.gmra.mxu3 %vm1870_vm1, %v1849_v60 }
 0x211   :  { %v2356_v0 = vmul.f32 0.5, %v2292_v62  ;;  %v1658_v1 = vpop.f32.mrf.mxu2 }
 0x212   :  { %v504_v2 = vpop.f32.mrf.mxu0  ;;  %v1082_v3 = vpop.f32.mrf.mxu1  ;;  %v1746_v11 = vadd.f32 %v1658_v1, %v1168_v5 }
 0x213   :  { %v2425_v13 = vsel %vm3671_vm3, %v2356_v0, %v2047_v42  ;;  %v2051_v4 = vpop.f32.mrf.mxu3  ;;  %v591_v6 = vadd.f32 %v3867_v22, %v504_v2 }
 0x214   :  { %2489 = vst [vmem:[%s4297_s6 + $0xe0] sm:$0xff] %v2425_v13  ;;  %v2052_v8 = vadd.f32 %v4015_v7, %v2051_v4  ;;  %v1810_v21 = vmax.f32 %v1746_v11, 0.0 }
 0x215   :  { %v1169_v12 = vadd.f32 %v1082_v3, %v591_v6 }
 0x216   :  { %v3261_v9 = vpop.eup %3260  ;;  %v2166_v39 = vmul.f32 0.5, %v2052_v8 }
 0x217   :  { %v2293_v10 = vadd.f32 1.0, %v3261_v9 }
 0x218   :  { %3262 = vtanh.f32 %v2166_v39 }
 0x219   :  { %v2357_v14 = vmul.f32 0.5, %v2293_v10  ;;  %v1660_v15 = vpop.f32.mrf.mxu2 }
 0x21a   :  { %v1747_v16 = vadd.f32 %v1660_v15, %v1169_v12  ;;  %v507_v17 = vpop.f32.mrf.mxu0  ;;  %v1085_v18 = vpop.f32.mrf.mxu1 }
 0x21b   :  { %v2426_v19 = vsel %vm3671_vm3, %v2357_v14, %v2049_v58  ;;  %v2053_v20 = vpop.f32.mrf.mxu3  ;;  %v592_v29 = vadd.f32 %v3867_v22, %v507_v17 }
 0x21c   :  { %2490 = vst [vmem:[%s4297_s6 + $0xe8] sm:$0xff] %v2426_v19  ;;  %v1811_v23 = vmax.f32 %v1747_v16, 0.0  ;;  %v2054_v24 = vadd.f32 %v4015_v7, %v2053_v20 }
 0x21d   :  { %v1170_v36 = vadd.f32 %v1085_v18, %v592_v29 }
 0x21e   :  { %v3263_v25 = vpop.eup %3262  ;;  %v1850_v26 = vpack.c.bf16 %v1811_v23, %v1810_v21  ;;  %v2167_v27 = vmul.f32 0.5, %v2054_v24 }
 0x21f   :  { %v2294_v28 = vadd.f32 1.0, %v3263_v25 }
 0x220   :  { %3264 = vtanh.f32 %v2167_v27  ;;  %3085 = vmatmul.msk.bf16.gmra.mxu3 %vm1870_vm1, %v1850_v26 }
 0x221   :  { %v2358_v30 = vmul.f32 0.5, %v2294_v28  ;;  %v1663_v31 = vpop.f32.mrf.mxu2 }
 0x222   :  { %v509_v32 = vpop.f32.mrf.mxu0  ;;  %v1087_v33 = vpop.f32.mrf.mxu1  ;;  %v1748_v43 = vadd.f32 %v1663_v31, %v1170_v36 }
 0x223   :  { %v2427_v34 = vsel %vm3671_vm3, %v2358_v30, %v2052_v8  ;;  %v2056_v35 = vpop.f32.mrf.mxu3  ;;  %v593_v37 = vadd.f32 %v3867_v22, %v509_v32 }
 0x224   :  { %2491 = vst [vmem:[%s4297_s6 + $0xf0] sm:$0xff] %v2427_v34  ;;  %v2057_v38 = vadd.f32 %v4015_v7, %v2056_v35  ;;  %v1812_v53 = vmax.f32 %v1748_v43, 0.0 }
 0x225   :  { %v1171_v45 = vadd.f32 %v1087_v33, %v593_v37 }
 0x226   :  { %v3265_v40 = vpop.eup %3264  ;;  %v2168_v41 = vmul.f32 0.5, %v2057_v38 }
 0x227   :  { %v2295_v42 = vadd.f32 1.0, %v3265_v40 }
 0x228   :  { %3266 = vtanh.f32 %v2168_v41 }
 0x229   :  { %v2359_v46 = vmul.f32 0.5, %v2295_v42  ;;  %v1665_v47 = vpop.f32.mrf.mxu2 }
 0x22a   :  { %v1749_v48 = vadd.f32 %v1665_v47, %v1171_v45  ;;  %v512_v49 = vpop.f32.mrf.mxu0  ;;  %v1090_v50 = vpop.f32.mrf.mxu1 }
 0x22b   :  { %v2428_v51 = vsel %vm3671_vm3, %v2359_v46, %v2054_v24  ;;  %v2058_v52 = vpop.f32.mrf.mxu3  ;;  %v594_v60 = vadd.f32 %v3867_v22, %v512_v49 }
 0x22c   :  { %2492 = vst [vmem:[%s4297_s6 + $0xf8] sm:$0xff] %v2428_v51  ;;  %v1813_v54 = vmax.f32 %v1749_v48, 0.0  ;;  %v2059_v55 = vadd.f32 %v4015_v7, %v2058_v52 }
 0x22d   :  { %v1172_v3 = vadd.f32 %v1090_v50, %v594_v60 }
 0x22e   :  { %v3267_v56 = vpop.eup %3266  ;;  %v1851_v57 = vpack.c.bf16 %v1813_v54, %v1812_v53  ;;  %v2169_v58 = vmul.f32 0.5, %v2059_v55 }
 0x22f   :  { %v2296_v59 = vadd.f32 1.0, %v3267_v56 }
 0x230   :  { %3268 = vtanh.f32 %v2169_v58  ;;  %3086 = vmatmul.msk.bf16.gmra.mxu3 %vm1870_vm1, %v1851_v57 }
 0x231   :  { %v2360_v61 = vmul.f32 0.5, %v2296_v59  ;;  %v1668_v62 = vpop.f32.mrf.mxu2 }
 0x232   :  { %v514_v63 = vpop.f32.mrf.mxu0  ;;  %v1092_v0 = vpop.f32.mrf.mxu1  ;;  %v1750_v9 = vadd.f32 %v1668_v62, %v1172_v3 }
 0x233   :  { %v2429_v1 = vsel %vm3671_vm3, %v2360_v61, %v2057_v38  ;;  %v2061_v2 = vpop.f32.mrf.mxu3  ;;  %v595_v13 = vadd.f32 %v3867_v22, %v514_v63 }
 0x234   :  { %2493 = vst [vmem:[%s4297_s6 + $0x100] sm:$0xff] %v2429_v1  ;;  %v2062_v4 = vadd.f32 %v4015_v7, %v2061_v2  ;;  %v1814_v18 = vmax.f32 %v1750_v9, 0.0 }
 0x235   :  { %v1173_v39 = vadd.f32 %v1092_v0, %v595_v13 }
 0x236   :  { %v3269_v5 = vpop.eup %3268  ;;  %v2170_v6 = vmul.f32 0.5, %v2062_v4 }
 0x237   :  { %v2297_v8 = vadd.f32 1.0, %v3269_v5 }
 0x238   :  { %3270 = vtanh.f32 %v2170_v6 }
 0x239   :  { %v2361_v10 = vmul.f32 0.5, %v2297_v8  ;;  %v1670_v11 = vpop.f32.mrf.mxu2 }
 0x23a   :  { %v1751_v12 = vadd.f32 %v1670_v11, %v1173_v39  ;;  %v517_v14 = vpop.f32.mrf.mxu0  ;;  %v1095_v15 = vpop.f32.mrf.mxu1 }
 0x23b   :  { %v2430_v16 = vsel %vm3671_vm3, %v2361_v10, %v2059_v55  ;;  %v2063_v17 = vpop.f32.mrf.mxu3  ;;  %v596_v26 = vadd.f32 %v3867_v22, %v517_v14 }
 0x23c   :  { %2494 = vst [vmem:[%s4297_s6 + $0x108] sm:$0xff] %v2430_v16  ;;  %v1815_v19 = vmax.f32 %v1751_v12, 0.0  ;;  %v2064_v20 = vadd.f32 %v4015_v7, %v2063_v17 }
 0x23d   :  { %v1174_v33 = vadd.f32 %v1095_v15, %v596_v26 }
 0x23e   :  { %v3271_v21 = vpop.eup %3270  ;;  %v1852_v23 = vpack.c.bf16 %v1815_v19, %v1814_v18  ;;  %v2171_v24 = vmul.f32 0.5, %v2064_v20 }
 0x23f   :  { %v2298_v25 = vadd.f32 1.0, %v3271_v21 }
 0x240   :  { %3272 = vtanh.f32 %v2171_v24  ;;  %3087 = vmatmul.msk.bf16.gmra.mxu3 %vm1870_vm1, %v1852_v23 }
 0x241   :  { %v2362_v27 = vmul.f32 0.5, %v2298_v25  ;;  %v1673_v28 = vpop.f32.mrf.mxu2 }
 0x242   :  { %v519_v29 = vpop.f32.mrf.mxu0  ;;  %v1097_v30 = vpop.f32.mrf.mxu1  ;;  %v1752_v40 = vadd.f32 %v1673_v28, %v1174_v33 }
 0x243   :  { %v2431_v31 = vsel %vm3671_vm3, %v2362_v27, %v2062_v4  ;;  %v2066_v32 = vpop.f32.mrf.mxu3  ;;  %v597_v34 = vadd.f32 %v3867_v22, %v519_v29 }
 0x244   :  { %2495 = vst [vmem:[%s4297_s6 + $0x110] sm:$0xff] %v2431_v31  ;;  %v2067_v35 = vadd.f32 %v4015_v7, %v2066_v32  ;;  %v1816_v50 = vmax.f32 %v1752_v40, 0.0 }
 0x245   :  { %v1175_v41 = vadd.f32 %v1097_v30, %v597_v34 }
 0x246   :  { %v3273_v36 = vpop.eup %3272  ;;  %v2172_v37 = vmul.f32 0.5, %v2067_v35 }
 0x247   :  { %v2299_v38 = vadd.f32 1.0, %v3273_v36 }
 0x248   :  { %3274 = vtanh.f32 %v2172_v37 }
 0x249   :  { %v2363_v42 = vmul.f32 0.5, %v2299_v38  ;;  %v1675_v43 = vpop.f32.mrf.mxu2 }
 0x24a   :  { %v1753_v45 = vadd.f32 %v1675_v43, %v1175_v41  ;;  %v522_v46 = vpop.f32.mrf.mxu0  ;;  %v1100_v47 = vpop.f32.mrf.mxu1 }
 0x24b   :  { %v2432_v48 = vsel %vm3671_vm3, %v2363_v42, %v2064_v20  ;;  %v2068_v49 = vpop.f32.mrf.mxu3  ;;  %v598_v57 = vadd.f32 %v3867_v22, %v522_v46 }
 0x24c   :  { %2496 = vst [vmem:[%s4297_s6 + $0x118] sm:$0xff] %v2432_v48  ;;  %v1817_v51 = vmax.f32 %v1753_v45, 0.0  ;;  %v2069_v52 = vadd.f32 %v4015_v7, %v2068_v49 }
 0x24d   :  { %v1176_v0 = vadd.f32 %v1100_v47, %v598_v57 }
 0x24e   :  { %v3275_v53 = vpop.eup %3274  ;;  %v1853_v54 = vpack.c.bf16 %v1817_v51, %v1816_v50  ;;  %v2173_v55 = vmul.f32 0.5, %v2069_v52 }
 0x24f   :  { %v2300_v56 = vadd.f32 1.0, %v3275_v53 }
 0x250   :  { %3276 = vtanh.f32 %v2173_v55  ;;  %3088 = vmatmul.msk.bf16.gmra.mxu3 %vm1870_vm1, %v1853_v54 }
 0x251   :  { %v2364_v58 = vmul.f32 0.5, %v2300_v56  ;;  %v1678_v59 = vpop.f32.mrf.mxu2 }
 0x252   :  { %v524_v60 = vpop.f32.mrf.mxu0  ;;  %v1102_v61 = vpop.f32.mrf.mxu1  ;;  %v1754_v5 = vadd.f32 %v1678_v59, %v1176_v0 }
 0x253   :  { %v2433_v62 = vsel %vm3671_vm3, %v2364_v58, %v2067_v35  ;;  %v2071_v63 = vpop.f32.mrf.mxu3  ;;  %v599_v1 = vadd.f32 %v3867_v22, %v524_v60 }
 0x254   :  { %2497 = vst [vmem:[%s4297_s6 + $0x120] sm:$0xff] %v2433_v62  ;;  %v2072_v2 = vadd.f32 %v4015_v7, %v2071_v63  ;;  %v1818_v15 = vmax.f32 %v1754_v5, 0.0 }
 0x255   :  { %v1177_v6 = vadd.f32 %v1102_v61, %v599_v1 }
 0x256   :  { %v3277_v3 = vpop.eup %3276  ;;  %v2174_v13 = vmul.f32 0.5, %v2072_v2 }
 0x257   :  { %v2301_v4 = vadd.f32 1.0, %v3277_v3 }
 0x258   :  { %3278 = vtanh.f32 %v2174_v13 }
 0x259   :  { %v2365_v8 = vmul.f32 0.5, %v2301_v4  ;;  %v1680_v9 = vpop.f32.mrf.mxu2 }
 0x25a   :  { %v1755_v39 = vadd.f32 %v1680_v9, %v1177_v6  ;;  %v527_v10 = vpop.f32.mrf.mxu0  ;;  %v1105_v11 = vpop.f32.mrf.mxu1 }
 0x25b   :  { %v2434_v12 = vsel %vm3671_vm3, %v2365_v8, %v2069_v52  ;;  %v2073_v14 = vpop.f32.mrf.mxu3  ;;  %v600_v23 = vadd.f32 %v3867_v22, %v527_v10 }
 0x25c   :  { %2498 = vst [vmem:[%s4297_s6 + $0x128] sm:$0xff] %v2434_v12  ;;  %v1819_v16 = vmax.f32 %v1755_v39, 0.0  ;;  %v2074_v17 = vadd.f32 %v4015_v7, %v2073_v14 }
 0x25d   :  { %v1178_v30 = vadd.f32 %v1105_v11, %v600_v23 }
 0x25e   :  { %v3279_v18 = vpop.eup %3278  ;;  %v1854_v19 = vpack.c.bf16 %v1819_v16, %v1818_v15  ;;  %v2175_v20 = vmul.f32 0.5, %v2074_v17 }
 0x25f   :  { %v2302_v21 = vadd.f32 1.0, %v3279_v18  ;;  %v3332_v18 = vld [vmem:[%s4292_s2] ss:$0 sm:$0xff] }
 0x260   :  { %3280 = vtanh.f32 %v2175_v20  ;;  %3089 = vmatmul.msk.bf16.gmra.mxu3 %vm1870_vm1, %v1854_v19 }
 0x261   :  { %v2366_v24 = vmul.f32 0.5, %v2302_v21  ;;  %v1683_v25 = vpop.f32.mrf.mxu2 }
 0x262   :  { %v529_v26 = vpop.f32.mrf.mxu0  ;;  %v1107_v27 = vpop.f32.mrf.mxu1  ;;  %v1756_v36 = vadd.f32 %v1683_v25, %v1178_v30 }
 0x263   :  { %v2435_v28 = vsel %vm3671_vm3, %v2366_v24, %v2072_v2  ;;  %v2076_v29 = vpop.f32.mrf.mxu3  ;;  %v601_v31 = vadd.f32 %v3867_v22, %v529_v26 }
 0x264   :  { %2499 = vst [vmem:[%s4297_s6 + $0x130] sm:$0xff] %v2435_v28  ;;  %v2077_v32 = vadd.f32 %v4015_v7, %v2076_v29  ;;  %v1820_v47 = vmax.f32 %v1756_v36, 0.0 }
 0x265   :  { %v1179_v37 = vadd.f32 %v1107_v27, %v601_v31 }
 0x266   :  { %v3281_v33 = vpop.eup %3280  ;;  %v2176_v34 = vmul.f32 0.5, %v2077_v32 }
 0x267   :  { %v2303_v35 = vadd.f32 1.0, %v3281_v33 }
 0x268   :  { %3282 = vtanh.f32 %v2176_v34 }
 0x269   :  { %v2367_v38 = vmul.f32 0.5, %v2303_v35  ;;  %v1685_v40 = vpop.f32.mrf.mxu2 }
 0x26a   :  { %v1757_v41 = vadd.f32 %v1685_v40, %v1179_v37  ;;  %v532_v42 = vpop.f32.mrf.mxu0  ;;  %v1110_v43 = vpop.f32.mrf.mxu1 }
 0x26b   :  { %v2436_v45 = vsel %vm3671_vm3, %v2367_v38, %v2074_v17  ;;  %v2078_v46 = vpop.f32.mrf.mxu3  ;;  %v602_v54 = vadd.f32 %v3867_v22, %v532_v42 }
 0x26c   :  { %2500 = vst [vmem:[%s4297_s6 + $0x138] sm:$0xff] %v2436_v45  ;;  %v1821_v48 = vmax.f32 %v1757_v41, 0.0  ;;  %v2079_v49 = vadd.f32 %v4015_v7, %v2078_v46 }
 0x26d   :  { %v1180_v61 = vadd.f32 %v1110_v43, %v602_v54 }
 0x26e   :  { %v3283_v50 = vpop.eup %3282  ;;  %v1855_v51 = vpack.c.bf16 %v1821_v48, %v1820_v47  ;;  %v2177_v52 = vmul.f32 0.5, %v2079_v49 }
 0x26f   :  { %v2304_v53 = vadd.f32 1.0, %v3283_v50 }
 0x270   :  { %3284 = vtanh.f32 %v2177_v52  ;;  %3090 = vmatmul.msk.bf16.gmra.mxu3 %vm1870_vm1, %v1855_v51 }
 0x271   :  { %v2368_v55 = vmul.f32 0.5, %v2304_v53  ;;  %v1688_v56 = vpop.f32.mrf.mxu2 }
 0x272   :  { %v534_v57 = vpop.f32.mrf.mxu0  ;;  %v1112_v59 = vpop.f32.mrf.mxu1  ;;  %v1758_v3 = vadd.f32 %v1688_v56, %v1180_v61 }
 0x273   :  { %v2437_v58 = vsel %vm3671_vm3, %v2368_v55, %v2077_v32  ;;  %v2081_v60 = vpop.f32.mrf.mxu3  ;;  %v603_v62 = vadd.f32 %v3867_v22, %v534_v57 }
 0x274   :  { %2501 = vst [vmem:[%s4297_s6 + $0x140] sm:$0xff] %v2437_v58  ;;  %v2082_v63 = vadd.f32 %v4015_v7, %v2081_v60  ;;  %v1822_v22 = vmax.f32 %v1758_v3, 0.0 }
 0x275   :  { %v1181_v13 = vadd.f32 %v1112_v59, %v603_v62 }
 0x276   :  { %v3285_v0 = vpop.eup %3284  ;;  %v2178_v1 = vmul.f32 0.5, %v2082_v63 }
 0x277   :  { %v2305_v2 = vadd.f32 1.0, %v3285_v0 }
 0x278   :  { %3286 = vtanh.f32 %v2178_v1 }
 0x279   :  { %v2369_v4 = vmul.f32 0.5, %v2305_v2  ;;  %v1690_v5 = vpop.f32.mrf.mxu2 }
 0x27a   :  { %v1759_v6 = vadd.f32 %v1690_v5, %v1181_v13  ;;  %v537_v8 = vpop.f32.mrf.mxu0  ;;  %v1115_v12 = vpop.f32.mrf.mxu1 }
 0x27b   :  { %v2438_v9 = vsel %vm3671_vm3, %v2369_v4, %v2079_v49  ;;  %v2083_v39 = vpop.f32.mrf.mxu3  ;;  %v604_v19 = vadd.f32 %v3332_v18, %v537_v8 }
 0x27c   :  { %2502 = vst [vmem:[%s4297_s6 + $0x148] sm:$0xff] %v2438_v9  ;;  %v1823_v10 = vmax.f32 %v1759_v6, 0.0  ;;  %v2084_v11 = vadd.f32 %v4015_v7, %v2083_v39 }
 0x27d   :  { %v1182_v26 = vadd.f32 %v1115_v12, %v604_v19 }
 0x27e   :  { %v3287_v14 = vpop.eup %3286  ;;  %v1856_v15 = vpack.c.bf16 %v1823_v10, %v1822_v22  ;;  %v2179_v16 = vmul.f32 0.5, %v2084_v11 }
 0x27f   :  { %v2306_v17 = vadd.f32 1.0, %v3287_v14 }
 0x280   :  { %3288 = vtanh.f32 %v2179_v16  ;;  %3091 = vmatmul.msk.bf16.gmra.mxu3 %vm1870_vm1, %v1856_v15 }
 0x281   :  { %v2370_v20 = vmul.f32 0.5, %v2306_v17  ;;  %v1693_v21 = vpop.f32.mrf.mxu2 }
 0x282   :  { %v539_v23 = vpop.f32.mrf.mxu0  ;;  %v1117_v32 = vpop.f32.mrf.mxu1  ;;  %v1760_v33 = vadd.f32 %v1693_v21, %v1182_v26 }
 0x283   :  { %v2439_v24 = vsel %vm3671_vm3, %v2370_v20, %v2082_v63  ;;  %v2086_v25 = vpop.f32.mrf.mxu3  ;;  %v605_v27 = vadd.f32 %v3332_v18, %v539_v23 }
 0x284   :  { %2503 = vst [vmem:[%s4297_s6 + $0x150] sm:$0xff] %v2439_v24  ;;  %v2087_v28 = vadd.f32 %v4015_v7, %v2086_v25  ;;  %v1824_v41 = vmax.f32 %v1760_v33, 0.0 }
 0x285   :  { %v1183_v34 = vadd.f32 %v1117_v32, %v605_v27 }
 0x286   :  { %v3289_v29 = vpop.eup %3288  ;;  %v2180_v30 = vmul.f32 0.5, %v2087_v28 }
 0x287   :  { %v2307_v31 = vadd.f32 1.0, %v3289_v29 }
 0x288   :  { %3290 = vtanh.f32 %v2180_v30 }
 0x289   :  { %v2371_v35 = vmul.f32 0.5, %v2307_v31  ;;  %v1695_v36 = vpop.f32.mrf.mxu2 }
 0x28a   :  { %v1761_v37 = vadd.f32 %v1695_v36, %v1183_v34 }
 0x28b   :  { %v2440_v38 = vsel %vm3671_vm3, %v2371_v35, %v2084_v11  ;;  %v2088_v40 = vpop.f32.mrf.mxu3 }
 0x28c   :  { %2504 = vst [vmem:[%s4297_s6 + $0x158] sm:$0xff] %v2440_v38  ;;  %v1825_v42 = vmax.f32 %v1761_v37, 0.0  ;;  %v2089_v43 = vadd.f32 %v4015_v7, %v2088_v40 }
 0x28e   :  { %v3291_v45 = vpop.eup %3290  ;;  %v1857_v46 = vpack.c.bf16 %v1825_v42, %v1824_v41  ;;  %v2181_v47 = vmul.f32 0.5, %v2089_v43 }
 0x28f   :  { %v2308_v48 = vadd.f32 1.0, %v3291_v45 }
 0x290   :  { %3292 = vtanh.f32 %v2181_v47  ;;  %3092 = vmatmul.msk.bf16.gmra.mxu3 %vm1870_vm1, %v1857_v46 }
 0x291   :  { %v2372_v49 = vmul.f32 0.5, %v2308_v48 }
 0x293   :  { %v2441_v50 = vsel %vm3671_vm3, %v2372_v49, %v2087_v28  ;;  %v2091_v51 = vpop.f32.mrf.mxu3 }
 0x294   :  { %2505 = vst [vmem:[%s4297_s6 + $0x160] sm:$0xff] %v2441_v50  ;;  %v2092_v52 = vadd.f32 %v4015_v7, %v2091_v51 }
 0x296   :  { %v3293_v53 = vpop.eup %3292  ;;  %v2182_v54 = vmul.f32 0.5, %v2092_v52 }
 0x297   :  { %v2309_v55 = vadd.f32 1.0, %v3293_v53 }
 0x298   :  { %3294 = vtanh.f32 %v2182_v54 }
 0x299   :  { %v2373_v56 = vmul.f32 0.5, %v2309_v55 }
 0x29b   :  { %v2442_v57 = vsel %vm3671_vm3, %v2373_v56, %v2089_v43  ;;  %v2093_v58 = vpop.f32.mrf.mxu3 }
 0x29c   :  { %2506 = vst [vmem:[%s4297_s6 + $0x168] sm:$0xff] %v2442_v57  ;;  %v2094_v59 = vadd.f32 %v4015_v7, %v2093_v58 }
 0x29e   :  { %v3295_v60 = vpop.eup %3294  ;;  %v2183_v61 = vmul.f32 0.5, %v2094_v59 }
 0x29f   :  { %v2310_v62 = vadd.f32 1.0, %v3295_v60 }
 0x2a0   :  { %3296 = vtanh.f32 %v2183_v61 }
 0x2a1   :  { %v2374_v63 = vmul.f32 0.5, %v2310_v62 }
 0x2a3   :  { %v2443_v0 = vsel %vm3671_vm3, %v2374_v63, %v2092_v52  ;;  %v2096_v1 = vpop.f32.mrf.mxu3 }
 0x2a4   :  { %2507 = vst [vmem:[%s4297_s6 + $0x170] sm:$0xff] %v2443_v0  ;;  %v2097_v2 = vadd.f32 %v4015_v7, %v2096_v1 }
 0x2a6   :  { %v3297_v3 = vpop.eup %3296  ;;  %v2184_v13 = vmul.f32 0.5, %v2097_v2 }
 0x2a7   :  { %v2311_v4 = vadd.f32 1.0, %v3297_v3 }
 0x2a8   :  { %3298 = vtanh.f32 %v2184_v13 }
 0x2a9   :  { %v2375_v5 = vmul.f32 0.5, %v2311_v4 }
 0x2ab   :  { %v2444_v6 = vsel %vm3671_vm3, %v2375_v5, %v2094_v59  ;;  %v2098_v8 = vpop.f32.mrf.mxu3 }
 0x2ac   :  { %2508 = vst [vmem:[%s4297_s6 + $0x178] sm:$0xff] %v2444_v6  ;;  %v2099_v9 = vadd.f32 %v4015_v7, %v2098_v8 }
 0x2ae   :  { %v3299_v39 = vpop.eup %3298  ;;  %v2185_v22 = vmul.f32 0.5, %v2099_v9 }
 0x2af   :  { %v2312_v10 = vadd.f32 1.0, %v3299_v39 }
 0x2b0   :  { %3300 = vtanh.f32 %v2185_v22 }
 0x2b1   :  { %v2376_v11 = vmul.f32 0.5, %v2312_v10 }
 0x2b3   :  { %v2445_v12 = vsel %vm3671_vm3, %v2376_v11, %v2097_v2  ;;  %v2101_v14 = vpop.f32.mrf.mxu3 }
 0x2b4   :  { %2509 = vst [vmem:[%s4297_s6 + $0x180] sm:$0xff] %v2445_v12  ;;  %v2102_v15 = vadd.f32 %v4015_v7, %v2101_v14 }
 0x2b6   :  { %v3301_v16 = vpop.eup %3300  ;;  %v2186_v17 = vmul.f32 0.5, %v2102_v15 }
 0x2b7   :  { %v2313_v18 = vadd.f32 1.0, %v3301_v16 }
 0x2b8   :  { %3302 = vtanh.f32 %v2186_v17 }
 0x2b9   :  { %v2377_v19 = vmul.f32 0.5, %v2313_v18 }
 0x2bb   :  { %v2446_v20 = vsel %vm3671_vm3, %v2377_v19, %v2099_v9  ;;  %v2103_v21 = vpop.f32.mrf.mxu3 }
 0x2bc   :  { %2510 = vst [vmem:[%s4297_s6 + $0x188] sm:$0xff] %v2446_v20  ;;  %v2104_v23 = vadd.f32 %v4015_v7, %v2103_v21 }
 0x2be   :  { %v3303_v24 = vpop.eup %3302  ;;  %v2187_v25 = vmul.f32 0.5, %v2104_v23 }
 0x2bf   :  { %v2314_v26 = vadd.f32 1.0, %v3303_v24 }
 0x2c0   :  { %3304 = vtanh.f32 %v2187_v25 }
 0x2c1   :  { %v2378_v27 = vmul.f32 0.5, %v2314_v26 }
 0x2c3   :  { %v2447_v28 = vsel %vm3671_vm3, %v2378_v27, %v2102_v15  ;;  %v2106_v29 = vpop.f32.mrf.mxu3 }
 0x2c4   :  { %2511 = vst [vmem:[%s4297_s6 + $0x190] sm:$0xff] %v2447_v28  ;;  %v2107_v30 = vadd.f32 %v4015_v7, %v2106_v29 }
 0x2c6   :  { %v3305_v31 = vpop.eup %3304  ;;  %v2188_v32 = vmul.f32 0.5, %v2107_v30 }
 0x2c7   :  { %v2315_v33 = vadd.f32 1.0, %v3305_v31 }
 0x2c8   :  { %3306 = vtanh.f32 %v2188_v32 }
 0x2c9   :  { %v2379_v34 = vmul.f32 0.5, %v2315_v33 }
 0x2cb   :  { %v2448_v35 = vsel %vm3671_vm3, %v2379_v34, %v2104_v23  ;;  %v2108_v36 = vpop.f32.mrf.mxu3 }
 0x2cc   :  { %2512 = vst [vmem:[%s4297_s6 + $0x198] sm:$0xff] %v2448_v35  ;;  %v2109_v37 = vadd.f32 %v4015_v7, %v2108_v36 }
 0x2ce   :  { %v3307_v38 = vpop.eup %3306  ;;  %v2189_v40 = vmul.f32 0.5, %v2109_v37 }
 0x2cf   :  { %v2316_v41 = vadd.f32 1.0, %v3307_v38 }
 0x2d0   :  { %3308 = vtanh.f32 %v2189_v40 }
 0x2d1   :  { %v2380_v42 = vmul.f32 0.5, %v2316_v41 }
 0x2d3   :  { %v2449_v43 = vsel %vm3671_vm3, %v2380_v42, %v2107_v30  ;;  %v2111_v45 = vpop.f32.mrf.mxu3 }
 0x2d4   :  { %2513 = vst [vmem:[%s4297_s6 + $0x1a0] sm:$0xff] %v2449_v43  ;;  %v2112_v46 = vadd.f32 %v4015_v7, %v2111_v45 }
 0x2d6   :  { %v3309_v47 = vpop.eup %3308  ;;  %v2190_v48 = vmul.f32 0.5, %v2112_v46 }
 0x2d7   :  { %v2317_v49 = vadd.f32 1.0, %v3309_v47 }
 0x2d8   :  { %3310 = vtanh.f32 %v2190_v48 }
 0x2d9   :  { %v2381_v50 = vmul.f32 0.5, %v2317_v49 }
 0x2db   :  { %v2450_v51 = vsel %vm3671_vm3, %v2381_v50, %v2109_v37  ;;  %v2113_v52 = vpop.f32.mrf.mxu3 }
 0x2dc   :  { %2514 = vst [vmem:[%s4297_s6 + $0x1a8] sm:$0xff] %v2450_v51  ;;  %v2114_v53 = vadd.f32 %v4015_v7, %v2113_v52 }
 0x2de   :  { %v3311_v54 = vpop.eup %3310  ;;  %v2191_v55 = vmul.f32 0.5, %v2114_v53 }
 0x2df   :  { %v2318_v56 = vadd.f32 1.0, %v3311_v54 }
 0x2e0   :  { %3312 = vtanh.f32 %v2191_v55 }
 0x2e1   :  { %v2382_v57 = vmul.f32 0.5, %v2318_v56 }
 0x2e3   :  { %v2451_v58 = vsel %vm3671_vm3, %v2382_v57, %v2112_v46  ;;  %v2116_v59 = vpop.f32.mrf.mxu3 }
 0x2e4   :  { %2515 = vst [vmem:[%s4297_s6 + $0x1b0] sm:$0xff] %v2451_v58  ;;  %v2117_v60 = vadd.f32 %v4015_v7, %v2116_v59 }
 0x2e6   :  { %v3313_v61 = vpop.eup %3312  ;;  %v2192_v62 = vmul.f32 0.5, %v2117_v60 }
 0x2e7   :  { %v2319_v63 = vadd.f32 1.0, %v3313_v61 }
 0x2e8   :  { %3314 = vtanh.f32 %v2192_v62 }
 0x2e9   :  { %v2383_v0 = vmul.f32 0.5, %v2319_v63 }
 0x2eb   :  { %v2452_v1 = vsel %vm3671_vm3, %v2383_v0, %v2114_v53  ;;  %v2118_v2 = vpop.f32.mrf.mxu3 }
 0x2ec   :  { %2516 = vst [vmem:[%s4297_s6 + $0x1b8] sm:$0xff] %v2452_v1  ;;  %v2119_v3 = vadd.f32 %v4015_v7, %v2118_v2 }
 0x2ee   :  { %v3315_v13 = vpop.eup %3314  ;;  %v2193_v4 = vmul.f32 0.5, %v2119_v3 }
 0x2ef   :  { %v2320_v5 = vadd.f32 1.0, %v3315_v13 }
 0x2f0   :  { %3316 = vtanh.f32 %v2193_v4 }
 0x2f1   :  { %v2384_v6 = vmul.f32 0.5, %v2320_v5 }
 0x2f3   :  { %v2453_v8 = vsel %vm3671_vm3, %v2384_v6, %v2117_v60  ;;  %v2121_v9 = vpop.f32.mrf.mxu3 }
 0x2f4   :  { %2517 = vst [vmem:[%s4297_s6 + $0x1c0] sm:$0xff] %v2453_v8  ;;  %v2122_v39 = vadd.f32 %v4015_v7, %v2121_v9 }
 0x2f6   :  { %v3317_v22 = vpop.eup %3316  ;;  %v2194_v10 = vmul.f32 0.5, %v2122_v39 }
 0x2f7   :  { %v2321_v11 = vadd.f32 1.0, %v3317_v22 }
 0x2f8   :  { %3318 = vtanh.f32 %v2194_v10 }
 0x2f9   :  { %v2385_v12 = vmul.f32 0.5, %v2321_v11 }
 0x2fb   :  { %v2454_v14 = vsel %vm3671_vm3, %v2385_v12, %v2119_v3  ;;  %v2123_v15 = vpop.f32.mrf.mxu3 }
 0x2fc   :  { %2518 = vst [vmem:[%s4297_s6 + $0x1c8] sm:$0xff] %v2454_v14  ;;  %v2124_v16 = vadd.f32 %v4015_v7, %v2123_v15 }
 0x2fe   :  { %v3319_v17 = vpop.eup %3318  ;;  %v2195_v18 = vmul.f32 0.5, %v2124_v16 }
 0x2ff   :  { %v2322_v19 = vadd.f32 1.0, %v3319_v17 }
 0x300   :  { %3320 = vtanh.f32 %v2195_v18 }
 0x301   :  { %v2386_v20 = vmul.f32 0.5, %v2322_v19 }
 0x303   :  { %v2455_v21 = vsel %vm3671_vm3, %v2386_v20, %v2122_v39  ;;  %v2126_v23 = vpop.f32.mrf.mxu3 }
 0x304   :  { %2519 = vst [vmem:[%s4297_s6 + $0x1d0] sm:$0xff] %v2455_v21  ;;  %v2127_v24 = vadd.f32 %v4015_v7, %v2126_v23 }
 0x306   :  { %v3321_v25 = vpop.eup %3320  ;;  %v2196_v26 = vmul.f32 0.5, %v2127_v24 }
 0x307   :  { %v2323_v27 = vadd.f32 1.0, %v3321_v25 }
 0x308   :  { %3322 = vtanh.f32 %v2196_v26 }
 0x309   :  { %v2387_v28 = vmul.f32 0.5, %v2323_v27 }
 0x30b   :  { %v2456_v29 = vsel %vm3671_vm3, %v2387_v28, %v2124_v16  ;;  %v2128_v30 = vpop.f32.mrf.mxu3 }
 0x30c   :  { %2520 = vst [vmem:[%s4297_s6 + $0x1d8] sm:$0xff] %v2456_v29  ;;  %v2129_v31 = vadd.f32 %v4015_v7, %v2128_v30 }
 0x30e   :  { %v3323_v32 = vpop.eup %3322  ;;  %v2197_v33 = vmul.f32 0.5, %v2129_v31 }
 0x30f   :  { %v2324_v34 = vadd.f32 1.0, %v3323_v32 }
 0x310   :  { %3324 = vtanh.f32 %v2197_v33 }
 0x311   :  { %v2388_v35 = vmul.f32 0.5, %v2324_v34 }
 0x313   :  { %v2457_v36 = vsel %vm3671_vm3, %v2388_v35, %v2127_v24  ;;  %v2131_v37 = vpop.f32.mrf.mxu3 }
 0x314   :  { %2521 = vst [vmem:[%s4297_s6 + $0x1e0] sm:$0xff] %v2457_v36  ;;  %v2132_v38 = vadd.f32 %v4015_v7, %v2131_v37 }
 0x316   :  { %v3325_v40 = vpop.eup %3324  ;;  %v2198_v41 = vmul.f32 0.5, %v2132_v38 }
 0x317   :  { %v2325_v42 = vadd.f32 1.0, %v3325_v40 }
 0x318   :  { %3326 = vtanh.f32 %v2198_v41 }
 0x319   :  { %v2389_v43 = vmul.f32 0.5, %v2325_v42 }
 0x31b   :  { %v2458_v45 = vsel %vm3671_vm3, %v2389_v43, %v2129_v31  ;;  %v2133_v46 = vpop.f32.mrf.mxu3 }
 0x31c   :  { %2522 = vst [vmem:[%s4297_s6 + $0x1e8] sm:$0xff] %v2458_v45  ;;  %v2134_v47 = vadd.f32 %v4015_v7, %v2133_v46 }
 0x31e   :  { %v3327_v48 = vpop.eup %3326  ;;  %v2199_v49 = vmul.f32 0.5, %v2134_v47 }
 0x31f   :  { %v2326_v50 = vadd.f32 1.0, %v3327_v48 }
 0x320   :  { %3328 = vtanh.f32 %v2199_v49 }
 0x321   :  { %v2390_v51 = vmul.f32 0.5, %v2326_v50 }
 0x323   :  { %v2459_v52 = vsel %vm3671_vm3, %v2390_v51, %v2132_v38 }
 0x324   :  { %2523 = vst [vmem:[%s4297_s6 + $0x1f0] sm:$0xff] %v2459_v52 }
 0x326   :  { %v3329_v53 = vpop.eup %3328 }
 0x327   :  { %v2327_v54 = vadd.f32 1.0, %v3329_v53 }
 0x329   :  { %v2391_v55 = vmul.f32 0.5, %v2327_v54 }
 0x32b   :  { %v2460_v56 = vsel %vm3671_vm3, %v2391_v55, %v2134_v47 }
 0x32c   :  { %2524 = vst [vmem:[%s4297_s6 + $0x1f8] sm:$0xff] %v2460_v56 }

// kernel: reverse.1
= control target key start
LH: loop header
LB: loop body
LE: loop exit
PB: predicated region body
PF: predicated region fallthrough
CT: control target
= control target key end

     0   :  { %v2_v0 = vlaneseq  ;;  %s127_s0 = inlined_call_operand.vmem [shape: s32[16], index: 0, kind: input, shape index: {}]   ;;  %s128_s1 = inlined_call_operand.vmem [shape: s32[16], index: 1, kind: output, shape index: {}]  }
   0x2   :  { %v3_v1 = vsub.s32 15, %v2_v0 }
   0x4   :  { %4 = vset.pattern.permute.xlu0 %v3_v1 }
   0x5   :  { %v45_v2 = vld [vmem:[#allocation1] sm:$0x1]  ;;  %v22_v3 = vld [vmem:[%s127_s0] sm:$0x1]  ;;  %v60_v10 = vshrl.u32 %v2_v0, 7 }
   0x6   :  { %46 = vst [vmem:[#allocation0] sm:$0x1] %v45_v2 }
   0x7   :  { %23 = vst [vmem:[#allocation1 + $0x1] sm:$0x1] %v22_v3  ;;  %vm61_vm0 = vcmp.lt.s32.totalorder %v60_v10, 1 }
   0xd   :  { %v48_v4 = vld [vmem:[#allocation0 + $0x7] ss:$-1 sm:$0xff] }
   0xe   :  { %v49_v5 = vrot.slane %v48_v4, 7  ;;  %v42_v6 = vld [vmem:[#allocation1 + $0x1] sm:$0x1] }
   0xf   :  { %44 = vst [vmem:[#allocation0 + $0x8] sm:$0x1] %v42_v6 }
  0x10   :  { %50 = vperm.xlu0 %4, %v49_v5  }
  0x16   :  { %v55_v7 = vld [vmem:[#allocation0 + $0xf] ss:$-1 sm:$0xff] }
  0x17   :  { %v56_v8 = vrot.slane %v55_v7, 7 }
  0x19   :  { %57 = vperm.xlu0 %4, %v56_v8  }
  0x82   :  { %v51_v9 = vpop.permute.xlu0 %50 }
  0x83   :  { %52 = vst [vmem:[#allocation2] sm:$0xff] %v51_v9 }
  0x8b   :  { %v58_v11 = vpop.permute.xlu0 %57 }
  0x8c   :  { %62 = vst.msk [vmem:[#allocation2] sm:$0xff] %vm61_vm0, %v58_v11 }
  0x93   :  { %v65_v12 = vld [vmem:[#allocation2] sm:$0x1] }
  0x94   :  { %68 = vst [vmem:[#allocation3] sm:$0x1] %v65_v12 }
  0x9b   :  { %v85_v13 = vld [vmem:[#allocation3] sm:$0x1] }
  0x9c   :  { %86 = vst [vmem:[%s128_s1] sm:$0x1] %v85_v13 }

</bundles_post_ra>
